<compile_context>
chip_gen: v7x
topology: tpu7x:2x2x1
jax: 0.10.0
libtpu: 0.0.40
codegen_flags: <defaults>
</compile_context>

<pallas_src>
import functools

import jax
import jax.numpy as jnp
from jax.experimental import pallas as pl
from jax.experimental.pallas import tpu as pltpu


# ------------------------------- fused kernel --------------------------------

def _mi_fused_kernel(patch_ref, wconv_ref, whead_ref, bias_ref, em_ref, ep_ref,
                     o_ref, *, latent, batch, pix):
    """Fully fused Mutual_info_reg forward.

    patch_ref : (B*P, 2*Cin*16) bf16   [im2col(fm) | im2col(fp)]
    wconv_ref : (2*Cin*16, 2*ch) bf16  block-diag [[w1, 0], [0, w2]]
    whead_ref : (2*ch, P*4L)     bf16  pixel-expanded composed head weights
    bias_ref  : (1, 4L)          f32   fc biases (+ layer4 bias folded, x255)
    em_ref    : (B, L)           f32   reparam noise, rgb path
    ep_ref    : (B, L)           f32   reparam noise, depth path
    o_ref     : (1, 128)         f32   final loss broadcast over lanes
    """
    L = latent
    kh = 4 * L                       # [mu_m | logvar_m | mu_p | logvar_p]
    bp = batch * pix                 # conv-GEMM rows
    pk = pix * kh                    # expanded head columns

    # ---- stage 1: both 4x4/stride-2 convs as ONE GEMM (block-diag weight) ---
    act = jnp.dot(patch_ref[...], wconv_ref[...],
                  preferred_element_type=jnp.float32)        # (B*P, 2*ch)
    act = jnp.maximum(act, 0.01 * act)                        # LeakyReLU(0.01)

    # ---- stage 2: head GEMM with the per-batch flatten folded in ------------
    # Column block p' of `whead` holds the composed head weights of pixel p';
    # row r = (b, p) of `act` only contributes to block p' == p.  GEMM +
    # diagonal mask + block-sum therefore equals feat[b] @ A (no reshape).
    z = jnp.dot(act.astype(jnp.bfloat16), whead_ref[...],
                preferred_element_type=jnp.float32)           # (B*P, P*4L)

    row_p = jax.lax.broadcasted_iota(jnp.int32, (bp, pk), 0) & (pix - 1)
    shift = kh.bit_length() - 1
    col_p = jax.lax.broadcasted_iota(jnp.int32, (bp, pk), 1) >> shift
    z = jnp.where(row_p == col_p, z, 0.0)

    # Fold the P column blocks together (tree of lane-slice adds).
    cur = pk
    while cur > kh:
        half = cur // 2
        z = z[:, :half] + z[:, half:cur]
        cur = half
    # z is now (B*P, 4L): per-(batch, pixel) head contribution.

    em = em_ref[...]
    ep = ep_ref[...]
    bias = bias_ref[...]

    kld_sum = jnp.zeros((1, 1), jnp.float32)
    ce_rd = jnp.zeros((1, 1), jnp.float32)
    ce_dr = jnp.zeros((1, 1), jnp.float32)

    for b in range(batch):           # tiny batch; unrolled at trace time
        h = jnp.sum(z[b * pix:(b + 1) * pix, :], axis=0, keepdims=True) + bias

        mu_m = jnp.tanh(h[:, 0 * L:1 * L])
        lv_m = jnp.tanh(h[:, 1 * L:2 * L])
        mu_p = jnp.tanh(h[:, 2 * L:3 * L])
        lv_p = jnp.tanh(h[:, 3 * L:4 * L])

        # reparametrize: eps * exp(0.5*logvar) + mu
        z_rgb = em[b:b + 1, :] * jnp.exp(0.5 * lv_m) + mu_m
        z_dep = ep[b:b + 1, :] * jnp.exp(0.5 * lv_p) + mu_p

        # KL(N(mu_m, exp(lv_m)) || N(mu_p, exp(lv_p))) + reverse, Independent
        # over the latent dim (scale = exp(logvar) => var = exp(2*logvar)).
        var_m = jnp.exp(2.0 * lv_m)
        var_p = jnp.exp(2.0 * lv_p)
        d2 = (mu_m - mu_p) ** 2
        kl_md = (lv_p - lv_m) + (var_m + d2) / (2.0 * var_p) - 0.5
        kl_dm = (lv_m - lv_p) + (var_p + d2) / (2.0 * var_m) - 0.5
        kld_sum = (kld_sum + jnp.sum(kl_md, keepdims=True)
                   + jnp.sum(kl_dm, keepdims=True))

        # BCE(reduction='sum') both directions; logs clamped at -100 as in
        # torch.nn.BCELoss (targets are detached in torch -> same forward).
        zr = 1.0 / (1.0 + jnp.exp(-z_rgb))
        zd = 1.0 / (1.0 + jnp.exp(-z_dep))
        log_zr = jnp.maximum(jnp.log(zr), -100.0)
        log1m_zr = jnp.maximum(jnp.log(1.0 - zr), -100.0)
        log_zd = jnp.maximum(jnp.log(zd), -100.0)
        log1m_zd = jnp.maximum(jnp.log(1.0 - zd), -100.0)
        ce_rd = ce_rd - jnp.sum(zd * log_zr + (1.0 - zd) * log1m_zr,
                                keepdims=True)
        ce_dr = ce_dr - jnp.sum(zr * log_zd + (1.0 - zr) * log1m_zd,
                                keepdims=True)

    bi_di_kld = kld_sum / float(batch)
    loss = 1.0 - bi_di_kld / (ce_rd + ce_dr)
    o_ref[...] = jnp.broadcast_to(loss, o_ref.shape)   # lane-dense scalar tile


# ------------------------- wrapper-side data/weight prep ---------------------

def _im2col_s2k4(x):
    """(B, C, H, W) -> (B*Ho*Wo, C*16) patches of a 4x4 / stride-2 / pad-1 conv.

    Feature order is (cin, ky, kx), matching torch weight.reshape(Cout, Cin*16).
    Rows are ordered (b, y, x)."""
    B, C, H, W = x.shape
    Ho, Wo = H // 2, W // 2
    xp = jnp.pad(x, ((0, 0), (0, 0), (1, 1), (1, 1)))
    cols = [xp[:, :, dy:dy + 2 * Ho:2, dx:dx + 2 * Wo:2]
            for dy in range(4) for dx in range(4)]
    p = jnp.stack(cols, axis=0)               # (16, B, C, Ho, Wo)
    p = jnp.transpose(p, (1, 3, 4, 2, 0))     # (B, Ho, Wo, C, 16)
    return p.reshape(B * Ho * Wo, C * 16)


def _compose_conv_fc(wconv, wfc, hh, ww):
    """Compose a 4x4/stride-2/pad-1 conv with a Linear on its NCHW-flattened
    output into one matrix M of shape (hh*ww*Cin, K) so that
        fc(nchw_flatten(conv(a))) == flat(a) @ M
    where `a` is (Cin, hh, ww) and flat() flattens in (y, x, cin) order with
    cin fastest (exactly the (pixel, channel) order of the conv-stage GEMM)."""
    cout, cin, kh, kw = wconv.shape
    mid_h, mid_w = hh // 2, ww // 2
    k = wfc.shape[0]
    wfc_r = wfc.reshape(k, cout, mid_h, mid_w)
    t = jnp.einsum('koij,ocab->kcijab', wfc_r, wconv)
    mp = jnp.zeros((hh + 2, ww + 2, cin, k), jnp.float32)
    for a in range(kh):
        for b in range(kw):
            contrib = jnp.transpose(t[:, :, :, :, a, b], (2, 3, 1, 0))  # (i,j,cin,k)
            mp = mp.at[a:a + 2 * mid_h:2, b:b + 2 * mid_w:2, :, :].add(contrib)
    return mp[1:1 + hh, 1:1 + ww].reshape(hh * ww * cin, k)


def precompute(params, H, W):
    """One-time weight prep (hoisted out of the per-call path)."""
    hh, ww = H // 2, W // 2                 # layer1/layer2 output spatial dims
    P = hh * ww
    ch, cin = params['w1'].shape[0], params['w1'].shape[1]
    lat = params['fc1_rgb_w'].shape[0]
    mid_h, mid_w = hh // 2, ww // 2
    kdim = cin * 16
    kh = 4 * lat

    # Block-diagonal stage-1 conv weight: [pm | pp] @ [[w1, 0], [0, w2]].
    w1m = params['w1'].reshape(ch, kdim).T
    w2m = params['w2'].reshape(ch, kdim).T
    w_conv = jnp.zeros((2 * kdim, 2 * ch), jnp.float32)
    w_conv = w_conv.at[:kdim, :ch].set(w1m)
    w_conv = w_conv.at[kdim:, ch:].set(w2m)
    w_conv = w_conv.astype(jnp.bfloat16)

    # Composed head matrices: 255 * (fc o flatten o layer3/4), mu | logvar.
    a_m = 255.0 * jnp.concatenate(
        [_compose_conv_fc(params['w3'], params['fc1_rgb_w'], hh, ww),
         _compose_conv_fc(params['w3'], params['fc2_rgb_w'], hh, ww)], axis=1)
    a_p = 255.0 * jnp.concatenate(
        [_compose_conv_fc(params['w4'], params['fc1_dep_w'], hh, ww),
         _compose_conv_fc(params['w4'], params['fc2_dep_w'], hh, ww)], axis=1)

    # Pixel-expanded head weight: column block p holds that pixel's (4L) head
    # weights; rows are the 2*ch packed conv-output channels.
    a_m_r = a_m.reshape(P, ch, 2 * lat)        # [p, c, k]
    a_p_r = a_p.reshape(P, ch, 2 * lat)
    w_head = jnp.zeros((2 * ch, P, kh), jnp.float32)
    w_head = w_head.at[:ch, :, :2 * lat].set(jnp.transpose(a_m_r, (1, 0, 2)))
    w_head = w_head.at[ch:, :, 2 * lat:].set(jnp.transpose(a_p_r, (1, 0, 2)))
    w_head = w_head.reshape(2 * ch, P * kh).astype(jnp.bfloat16)

    # Biases: fc biases, plus layer4's conv bias folded through the fcs (x255).
    def bias_contrib(wfc):
        return 255.0 * jnp.einsum(
            'koij,o->k', wfc.reshape(lat, ch, mid_h, mid_w), params['b4'])

    c_all = jnp.concatenate(
        [params['fc1_rgb_b'], params['fc2_rgb_b'],
         params['fc1_dep_b'] + bias_contrib(params['fc1_dep_w']),
         params['fc2_dep_b'] + bias_contrib(params['fc2_dep_w'])]
    ).reshape(1, kh).astype(jnp.float32)

    return dict(w_conv=w_conv, w_head=w_head, c_all=c_all)


# ------------------------------- forward pass --------------------------------

def mutual_info_forward(prepped, fm, fp, eps_m, eps_p):
    B, _, H, W = fm.shape
    P = (H // 2) * (W // 2)
    latent = eps_m.shape[1]
    kh = 4 * latent
    assert P & (P - 1) == 0 and kh & (kh - 1) == 0, \
        "pixel count and 4*latent must be powers of two"

    pm = _im2col_s2k4(fm)
    pp = _im2col_s2k4(fp)
    patches = jnp.concatenate([pm, pp], axis=1).astype(jnp.bfloat16)

    bp, twok = patches.shape
    twoch = prepped['w_conv'].shape[1]
    pk = prepped['w_head'].shape[1]

    kernel = functools.partial(_mi_fused_kernel, latent=latent, batch=B, pix=P)
    out = pl.pallas_call(
        kernel,
        out_shape=jax.ShapeDtypeStruct((1, 128), jnp.float32),
        grid=(1,),
        in_specs=[pl.BlockSpec((bp, twok), lambda i: (0, 0)),
                  pl.BlockSpec((twok, twoch), lambda i: (0, 0)),
                  pl.BlockSpec((twoch, pk), lambda i: (0, 0)),
                  pl.BlockSpec((1, kh), lambda i: (0, 0)),
                  pl.BlockSpec((B, latent), lambda i: (0, 0)),
                  pl.BlockSpec((B, latent), lambda i: (0, 0))],
        out_specs=pl.BlockSpec((1, 128), lambda i: (0, 0)),
        compiler_params=pltpu.CompilerParams(
            dimension_semantics=("arbitrary",)),
    )(patches, prepped['w_conv'], prepped['w_head'], prepped['c_all'],
      eps_m, eps_p)
    return out[0, 0]


# ----------------------------- parameter init --------------------------------

def init_params(key, input_channels, channels, mid, latent):
    ks = iter(jax.random.split(key, 16))

    def conv_w(cout, cin, k):
        s = 1.0 / float((cin * k * k) ** 0.5)
        return jax.random.uniform(next(ks), (cout, cin, k, k), jnp.float32, -s, s)

    def linear(cout, cin):
        s = 1.0 / float(cin ** 0.5)
        w = jax.random.uniform(next(ks), (cout, cin), jnp.float32, -s, s)
        b = jax.random.uniform(next(ks), (cout,), jnp.float32, -s, s)
        return w, b

    fdim = channels * mid * mid
    p = {}
    p['w1'] = conv_w(channels, input_channels, 4)   # layer1, no bias
    p['w2'] = conv_w(channels, input_channels, 4)   # layer2, no bias
    p['w3'] = conv_w(channels, channels, 4)         # layer3, no bias
    p['w4'] = conv_w(channels, channels, 4)         # layer4, with bias
    s4 = 1.0 / float((channels * 16) ** 0.5)
    p['b4'] = jax.random.uniform(next(ks), (channels,), jnp.float32, -s4, s4)
    p['fc1_rgb_w'], p['fc1_rgb_b'] = linear(latent, fdim)
    p['fc2_rgb_w'], p['fc2_rgb_b'] = linear(latent, fdim)
    p['fc1_dep_w'], p['fc1_dep_b'] = linear(latent, fdim)
    p['fc2_dep_w'], p['fc2_dep_b'] = linear(latent, fdim)
    return p


# ------------------------------------ main -----------------------------------

if __name__ == "__main__":
    B, input_channels, H, W = 2, 4, 16, 16
    channels, latent = 16, 4
    mid = H // 4   # spatial size after the two stride-2 convs

    key = jax.random.PRNGKey(0)
    kp, kfm, kfp, kem, kep = jax.random.split(key, 5)
    params = init_params(kp, input_channels, channels, mid, latent)

    fm = jax.random.normal(kfm, (B, input_channels, H, W), jnp.float32)
    fp = jax.random.normal(kfp, (B, input_channels, H, W), jnp.float32)
    eps_m = jax.random.normal(kem, (B, latent), jnp.float32)   # reparam noise
    eps_p = jax.random.normal(kep, (B, latent), jnp.float32)

    prepped = precompute(params, H, W)          # one-time weight prep
    fwd = jax.jit(mutual_info_forward)
    loss = fwd(prepped, fm, fp, eps_m, eps_p)
    jax.block_until_ready(loss)

    assert loss.shape == ()
    assert bool(jnp.isfinite(loss))
    print("KERNEL_OK")
</pallas_src>

<mosaic_0001>
module attributes {stable_mosaic.version = 11 : i64} {
  func.func @_mi_fused_kernel(%arg0: i32, %arg1: memref<128x128xbf16, #tpu.memory_space<vmem>>, %arg2: memref<128x32xbf16, #tpu.memory_space<vmem>>, %arg3: memref<32x1024xbf16, #tpu.memory_space<vmem>>, %arg4: memref<1x16xf32, #tpu.memory_space<vmem>>, %arg5: memref<2x4xf32, #tpu.memory_space<vmem>>, %arg6: memref<2x4xf32, #tpu.memory_space<vmem>>, %arg7: memref<1x128xf32, #tpu.memory_space<vmem>>) attributes {dimension_semantics = [#tpu.dimension_semantics<arbitrary>], iteration_bounds = array<i64: 1>, scalar_prefetch = 0 : i64, scratch_operands = 0 : i64, tpu.core_type = #tpu.core_type<tc>, window_params = [{pipeline_mode = #tpu.pipeline_mode<synchronous>, transform_indices = @transform_0, window_bounds = array<i64: 128, 128>}, {pipeline_mode = #tpu.pipeline_mode<synchronous>, transform_indices = @transform_1, window_bounds = array<i64: 128, 32>}, {pipeline_mode = #tpu.pipeline_mode<synchronous>, transform_indices = @transform_2, window_bounds = array<i64: 32, 1024>}, {pipeline_mode = #tpu.pipeline_mode<synchronous>, transform_indices = @transform_3, window_bounds = array<i64: 1, 16>}, {pipeline_mode = #tpu.pipeline_mode<synchronous>, transform_indices = @transform_4, window_bounds = array<i64: 2, 4>}, {pipeline_mode = #tpu.pipeline_mode<synchronous>, transform_indices = @transform_5, window_bounds = array<i64: 2, 4>}, {pipeline_mode = #tpu.pipeline_mode<synchronous>, transform_indices = @transform_6, window_bounds = array<i64: 1, 128>}]} {
    %c0 = arith.constant 0 : index
    %c0_0 = arith.constant 0 : index
    %0 = vector.load %arg1[%c0, %c0_0] : memref<128x128xbf16, #tpu.memory_space<vmem>>, vector<128x128xbf16>
    %c0_1 = arith.constant 0 : index
    %c0_2 = arith.constant 0 : index
    %1 = vector.load %arg2[%c0_1, %c0_2] : memref<128x32xbf16, #tpu.memory_space<vmem>>, vector<128x32xbf16>
    %cst = arith.constant dense<0.000000e+00> : vector<128x32xf32>
    %2 = tpu.matmul %0, %1, %cst {dimension_numbers = #tpu.dot_dimension_numbers<[1], [0], [0], [1], [0, 0, 1, 1], [], []>} : vector<128x128xbf16>, vector<128x32xbf16>, vector<128x32xf32> -> vector<128x32xf32>
    %cst_3 = arith.constant 0.00999999977 : f32
    %3 = vector.broadcast %cst_3 : f32 to vector<128x32xf32>
    %4 = arith.mulf %3, %2 : vector<128x32xf32>
    %5 = arith.maximumf %2, %4 : vector<128x32xf32>
    %6 = arith.truncf %5 : vector<128x32xf32> to vector<128x32xbf16>
    %c0_4 = arith.constant 0 : index
    %c0_5 = arith.constant 0 : index
    %7 = vector.load %arg3[%c0_4, %c0_5] : memref<32x1024xbf16, #tpu.memory_space<vmem>>, vector<32x1024xbf16>
    %cst_6 = arith.constant dense<0.000000e+00> : vector<128x1024xf32>
    %8 = tpu.matmul %6, %7, %cst_6 {dimension_numbers = #tpu.dot_dimension_numbers<[1], [0], [0], [1], [0, 0, 1, 1], [], []>} : vector<128x32xbf16>, vector<32x1024xbf16>, vector<128x1024xf32> -> vector<128x1024xf32>
    %9 = tpu.iota {dimensions = array<i32: 0>} : vector<128x1024xi32>
    %c63_i32 = arith.constant 63 : i32
    %10 = vector.broadcast %c63_i32 : i32 to vector<128x1024xi32>
    %11 = arith.andi %9, %10 : vector<128x1024xi32>
    %12 = tpu.iota {dimensions = array<i32: 1>} : vector<128x1024xi32>
    %c4_i32 = arith.constant 4 : i32
    %13 = vector.broadcast %c4_i32 : i32 to vector<128x1024xi32>
    %14 = arith.shrsi %12, %13 : vector<128x1024xi32>
    %15 = arith.cmpi eq, %11, %14 : vector<128x1024xi32>
    %cst_7 = arith.constant 0.000000e+00 : f32
    %16 = vector.broadcast %cst_7 : f32 to vector<128x1024xf32>
    %17 = arith.select %15, %8, %16 : vector<128x1024xi1>, vector<128x1024xf32>
    %18 = vector.extract_strided_slice %17 {offsets = [0, 0], sizes = [128, 512], strides = [1, 1]} : vector<128x1024xf32> to vector<128x512xf32>
    %19 = vector.extract_strided_slice %17 {offsets = [0, 512], sizes = [128, 512], strides = [1, 1]} : vector<128x1024xf32> to vector<128x512xf32>
    %20 = arith.addf %18, %19 : vector<128x512xf32>
    %21 = vector.extract_strided_slice %20 {offsets = [0, 0], sizes = [128, 256], strides = [1, 1]} : vector<128x512xf32> to vector<128x256xf32>
    %22 = vector.extract_strided_slice %20 {offsets = [0, 256], sizes = [128, 256], strides = [1, 1]} : vector<128x512xf32> to vector<128x256xf32>
    %23 = arith.addf %21, %22 : vector<128x256xf32>
    %24 = vector.extract_strided_slice %23 {offsets = [0, 0], sizes = [128, 128], strides = [1, 1]} : vector<128x256xf32> to vector<128x128xf32>
    %25 = vector.extract_strided_slice %23 {offsets = [0, 128], sizes = [128, 128], strides = [1, 1]} : vector<128x256xf32> to vector<128x128xf32>
    %26 = arith.addf %24, %25 : vector<128x128xf32>
    %27 = vector.extract_strided_slice %26 {offsets = [0, 0], sizes = [128, 64], strides = [1, 1]} : vector<128x128xf32> to vector<128x64xf32>
    %28 = vector.extract_strided_slice %26 {offsets = [0, 64], sizes = [128, 64], strides = [1, 1]} : vector<128x128xf32> to vector<128x64xf32>
    %29 = arith.addf %27, %28 : vector<128x64xf32>
    %30 = vector.extract_strided_slice %29 {offsets = [0, 0], sizes = [128, 32], strides = [1, 1]} : vector<128x64xf32> to vector<128x32xf32>
    %31 = vector.extract_strided_slice %29 {offsets = [0, 32], sizes = [128, 32], strides = [1, 1]} : vector<128x64xf32> to vector<128x32xf32>
    %32 = arith.addf %30, %31 : vector<128x32xf32>
    %33 = vector.extract_strided_slice %32 {offsets = [0, 0], sizes = [128, 16], strides = [1, 1]} : vector<128x32xf32> to vector<128x16xf32>
    %34 = vector.extract_strided_slice %32 {offsets = [0, 16], sizes = [128, 16], strides = [1, 1]} : vector<128x32xf32> to vector<128x16xf32>
    %35 = arith.addf %33, %34 : vector<128x16xf32>
    %c0_8 = arith.constant 0 : index
    %c0_9 = arith.constant 0 : index
    %36 = vector.load %arg5[%c0_8, %c0_9] : memref<2x4xf32, #tpu.memory_space<vmem>>, vector<2x4xf32>
    %c0_10 = arith.constant 0 : index
    %c0_11 = arith.constant 0 : index
    %37 = vector.load %arg6[%c0_10, %c0_11] : memref<2x4xf32, #tpu.memory_space<vmem>>, vector<2x4xf32>
    %c0_12 = arith.constant 0 : index
    %c0_13 = arith.constant 0 : index
    %38 = vector.load %arg4[%c0_12, %c0_13] : memref<1x16xf32, #tpu.memory_space<vmem>>, vector<1x16xf32>
    %cst_14 = arith.constant 0.000000e+00 : f32
    %39 = vector.broadcast %cst_14 : f32 to vector<1x1xf32>
    %cst_15 = arith.constant 0.000000e+00 : f32
    %40 = vector.broadcast %cst_15 : f32 to vector<1x1xf32>
    %cst_16 = arith.constant 0.000000e+00 : f32
    %41 = vector.broadcast %cst_16 : f32 to vector<1x1xf32>
    %42 = vector.extract_strided_slice %35 {offsets = [0, 0], sizes = [64, 16], strides = [1, 1]} : vector<128x16xf32> to vector<64x16xf32>
    %cst_17 = arith.constant dense<0.000000e+00> : vector<16xf32>
    %43 = vector.multi_reduction <add>, %42, %cst_17 [0] : vector<64x16xf32> to vector<16xf32>
    %44 = vector.shape_cast %43 : vector<16xf32> to vector<1x16xf32>
    %45 = arith.addf %44, %38 : vector<1x16xf32>
    %46 = vector.extract_strided_slice %45 {offsets = [0, 0], sizes = [1, 4], strides = [1, 1]} : vector<1x16xf32> to vector<1x4xf32>
    %47 = math.tanh %46 : vector<1x4xf32>
    %48 = vector.extract_strided_slice %45 {offsets = [0, 4], sizes = [1, 4], strides = [1, 1]} : vector<1x16xf32> to vector<1x4xf32>
    %49 = math.tanh %48 : vector<1x4xf32>
    %50 = vector.extract_strided_slice %45 {offsets = [0, 8], sizes = [1, 4], strides = [1, 1]} : vector<1x16xf32> to vector<1x4xf32>
    %51 = math.tanh %50 : vector<1x4xf32>
    %52 = vector.extract_strided_slice %45 {offsets = [0, 12], sizes = [1, 4], strides = [1, 1]} : vector<1x16xf32> to vector<1x4xf32>
    %53 = math.tanh %52 : vector<1x4xf32>
    %54 = vector.extract_strided_slice %36 {offsets = [0, 0], sizes = [1, 4], strides = [1, 1]} : vector<2x4xf32> to vector<1x4xf32>
    %cst_18 = arith.constant 5.000000e-01 : f32
    %55 = vector.broadcast %cst_18 : f32 to vector<1x4xf32>
    %56 = arith.mulf %55, %49 : vector<1x4xf32>
    %57 = math.exp %56 : vector<1x4xf32>
    %58 = arith.mulf %54, %57 : vector<1x4xf32>
    %59 = arith.addf %58, %47 : vector<1x4xf32>
    %60 = vector.extract_strided_slice %37 {offsets = [0, 0], sizes = [1, 4], strides = [1, 1]} : vector<2x4xf32> to vector<1x4xf32>
    %cst_19 = arith.constant 5.000000e-01 : f32
    %61 = vector.broadcast %cst_19 : f32 to vector<1x4xf32>
    %62 = arith.mulf %61, %53 : vector<1x4xf32>
    %63 = math.exp %62 : vector<1x4xf32>
    %64 = arith.mulf %60, %63 : vector<1x4xf32>
    %65 = arith.addf %64, %51 : vector<1x4xf32>
    %cst_20 = arith.constant 2.000000e+00 : f32
    %66 = vector.broadcast %cst_20 : f32 to vector<1x4xf32>
    %67 = arith.mulf %66, %49 : vector<1x4xf32>
    %68 = math.exp %67 : vector<1x4xf32>
    %cst_21 = arith.constant 2.000000e+00 : f32
    %69 = vector.broadcast %cst_21 : f32 to vector<1x4xf32>
    %70 = arith.mulf %69, %53 : vector<1x4xf32>
    %71 = math.exp %70 : vector<1x4xf32>
    %72 = arith.subf %47, %51 : vector<1x4xf32>
    %73 = arith.mulf %72, %72 : vector<1x4xf32>
    %74 = arith.subf %53, %49 : vector<1x4xf32>
    %75 = arith.addf %68, %73 : vector<1x4xf32>
    %cst_22 = arith.constant 2.000000e+00 : f32
    %76 = vector.broadcast %cst_22 : f32 to vector<1x4xf32>
    %77 = arith.mulf %76, %71 : vector<1x4xf32>
    %78 = arith.divf %75, %77 : vector<1x4xf32>
    %79 = arith.addf %74, %78 : vector<1x4xf32>
    %cst_23 = arith.constant 5.000000e-01 : f32
    %80 = vector.broadcast %cst_23 : f32 to vector<1x4xf32>
    %81 = arith.subf %79, %80 : vector<1x4xf32>
    %82 = arith.subf %49, %53 : vector<1x4xf32>
    %83 = arith.addf %71, %73 : vector<1x4xf32>
    %cst_24 = arith.constant 2.000000e+00 : f32
    %84 = vector.broadcast %cst_24 : f32 to vector<1x4xf32>
    %85 = arith.mulf %84, %68 : vector<1x4xf32>
    %86 = arith.divf %83, %85 : vector<1x4xf32>
    %87 = arith.addf %82, %86 : vector<1x4xf32>
    %cst_25 = arith.constant 5.000000e-01 : f32
    %88 = vector.broadcast %cst_25 : f32 to vector<1x4xf32>
    %89 = arith.subf %87, %88 : vector<1x4xf32>
    %90 = vector.shape_cast %81 : vector<1x4xf32> to vector<1x1x4xf32>
    %cst_26 = arith.constant dense<0.000000e+00> : vector<1xf32>
    %91 = vector.multi_reduction <add>, %90, %cst_26 [1, 2] : vector<1x1x4xf32> to vector<1xf32>
    %92 = vector.shape_cast %91 : vector<1xf32> to vector<1x1x1xf32>
    %93 = vector.extract %92[0, 0, 0] : f32 from vector<1x1x1xf32>
    %94 = vector.broadcast %93 : f32 to vector<1x1xf32>
    %95 = arith.addf %39, %94 : vector<1x1xf32>
    %96 = vector.shape_cast %89 : vector<1x4xf32> to vector<1x1x4xf32>
    %cst_27 = arith.constant dense<0.000000e+00> : vector<1xf32>
    %97 = vector.multi_reduction <add>, %96, %cst_27 [1, 2] : vector<1x1x4xf32> to vector<1xf32>
    %98 = vector.shape_cast %97 : vector<1xf32> to vector<1x1x1xf32>
    %99 = vector.extract %98[0, 0, 0] : f32 from vector<1x1x1xf32>
    %100 = vector.broadcast %99 : f32 to vector<1x1xf32>
    %101 = arith.addf %95, %100 : vector<1x1xf32>
    %cst_28 = arith.constant 0.000000e+00 : f32
    %102 = vector.broadcast %cst_28 : f32 to vector<1x4xf32>
    %103 = arith.subf %102, %59 : vector<1x4xf32>
    %104 = math.exp %103 : vector<1x4xf32>
    %cst_29 = arith.constant 1.000000e+00 : f32
    %105 = vector.broadcast %cst_29 : f32 to vector<1x4xf32>
    %106 = arith.addf %105, %104 : vector<1x4xf32>
    %cst_30 = arith.constant 1.000000e+00 : f32
    %107 = vector.broadcast %cst_30 : f32 to vector<1x4xf32>
    %108 = arith.divf %107, %106 : vector<1x4xf32>
    %cst_31 = arith.constant 0.000000e+00 : f32
    %109 = vector.broadcast %cst_31 : f32 to vector<1x4xf32>
    %110 = arith.subf %109, %65 : vector<1x4xf32>
    %111 = math.exp %110 : vector<1x4xf32>
    %cst_32 = arith.constant 1.000000e+00 : f32
    %112 = vector.broadcast %cst_32 : f32 to vector<1x4xf32>
    %113 = arith.addf %112, %111 : vector<1x4xf32>
    %cst_33 = arith.constant 1.000000e+00 : f32
    %114 = vector.broadcast %cst_33 : f32 to vector<1x4xf32>
    %115 = arith.divf %114, %113 : vector<1x4xf32>
    %116 = math.log %108 : vector<1x4xf32>
    %cst_34 = arith.constant -1.000000e+02 : f32
    %117 = vector.broadcast %cst_34 : f32 to vector<1x4xf32>
    %118 = arith.maximumf %116, %117 : vector<1x4xf32>
    %cst_35 = arith.constant 1.000000e+00 : f32
    %119 = vector.broadcast %cst_35 : f32 to vector<1x4xf32>
    %120 = arith.subf %119, %108 : vector<1x4xf32>
    %121 = math.log %120 : vector<1x4xf32>
    %cst_36 = arith.constant -1.000000e+02 : f32
    %122 = vector.broadcast %cst_36 : f32 to vector<1x4xf32>
    %123 = arith.maximumf %121, %122 : vector<1x4xf32>
    %124 = math.log %115 : vector<1x4xf32>
    %cst_37 = arith.constant -1.000000e+02 : f32
    %125 = vector.broadcast %cst_37 : f32 to vector<1x4xf32>
    %126 = arith.maximumf %124, %125 : vector<1x4xf32>
    %cst_38 = arith.constant 1.000000e+00 : f32
    %127 = vector.broadcast %cst_38 : f32 to vector<1x4xf32>
    %128 = arith.subf %127, %115 : vector<1x4xf32>
    %129 = math.log %128 : vector<1x4xf32>
    %cst_39 = arith.constant -1.000000e+02 : f32
    %130 = vector.broadcast %cst_39 : f32 to vector<1x4xf32>
    %131 = arith.maximumf %129, %130 : vector<1x4xf32>
    %132 = arith.mulf %115, %118 : vector<1x4xf32>
    %cst_40 = arith.constant 1.000000e+00 : f32
    %133 = vector.broadcast %cst_40 : f32 to vector<1x4xf32>
    %134 = arith.subf %133, %115 : vector<1x4xf32>
    %135 = arith.mulf %134, %123 : vector<1x4xf32>
    %136 = arith.addf %132, %135 : vector<1x4xf32>
    %137 = vector.shape_cast %136 : vector<1x4xf32> to vector<1x1x4xf32>
    %cst_41 = arith.constant dense<0.000000e+00> : vector<1xf32>
    %138 = vector.multi_reduction <add>, %137, %cst_41 [1, 2] : vector<1x1x4xf32> to vector<1xf32>
    %139 = vector.shape_cast %138 : vector<1xf32> to vector<1x1x1xf32>
    %140 = vector.extract %139[0, 0, 0] : f32 from vector<1x1x1xf32>
    %141 = vector.broadcast %140 : f32 to vector<1x1xf32>
    %142 = arith.subf %40, %141 : vector<1x1xf32>
    %143 = arith.mulf %108, %126 : vector<1x4xf32>
    %cst_42 = arith.constant 1.000000e+00 : f32
    %144 = vector.broadcast %cst_42 : f32 to vector<1x4xf32>
    %145 = arith.subf %144, %108 : vector<1x4xf32>
    %146 = arith.mulf %145, %131 : vector<1x4xf32>
    %147 = arith.addf %143, %146 : vector<1x4xf32>
    %148 = vector.shape_cast %147 : vector<1x4xf32> to vector<1x1x4xf32>
    %cst_43 = arith.constant dense<0.000000e+00> : vector<1xf32>
    %149 = vector.multi_reduction <add>, %148, %cst_43 [1, 2] : vector<1x1x4xf32> to vector<1xf32>
    %150 = vector.shape_cast %149 : vector<1xf32> to vector<1x1x1xf32>
    %151 = vector.extract %150[0, 0, 0] : f32 from vector<1x1x1xf32>
    %152 = vector.broadcast %151 : f32 to vector<1x1xf32>
    %153 = arith.subf %41, %152 : vector<1x1xf32>
    %154 = vector.extract_strided_slice %35 {offsets = [64, 0], sizes = [64, 16], strides = [1, 1]} : vector<128x16xf32> to vector<64x16xf32>
    %cst_44 = arith.constant dense<0.000000e+00> : vector<16xf32>
    %155 = vector.multi_reduction <add>, %154, %cst_44 [0] : vector<64x16xf32> to vector<16xf32>
    %156 = vector.shape_cast %155 : vector<16xf32> to vector<1x16xf32>
    %157 = arith.addf %156, %38 : vector<1x16xf32>
    %158 = vector.extract_strided_slice %157 {offsets = [0, 0], sizes = [1, 4], strides = [1, 1]} : vector<1x16xf32> to vector<1x4xf32>
    %159 = math.tanh %158 : vector<1x4xf32>
    %160 = vector.extract_strided_slice %157 {offsets = [0, 4], sizes = [1, 4], strides = [1, 1]} : vector<1x16xf32> to vector<1x4xf32>
    %161 = math.tanh %160 : vector<1x4xf32>
    %162 = vector.extract_strided_slice %157 {offsets = [0, 8], sizes = [1, 4], strides = [1, 1]} : vector<1x16xf32> to vector<1x4xf32>
    %163 = math.tanh %162 : vector<1x4xf32>
    %164 = vector.extract_strided_slice %157 {offsets = [0, 12], sizes = [1, 4], strides = [1, 1]} : vector<1x16xf32> to vector<1x4xf32>
    %165 = math.tanh %164 : vector<1x4xf32>
    %166 = vector.extract_strided_slice %36 {offsets = [1, 0], sizes = [1, 4], strides = [1, 1]} : vector<2x4xf32> to vector<1x4xf32>
    %cst_45 = arith.constant 5.000000e-01 : f32
    %167 = vector.broadcast %cst_45 : f32 to vector<1x4xf32>
    %168 = arith.mulf %167, %161 : vector<1x4xf32>
    %169 = math.exp %168 : vector<1x4xf32>
    %170 = arith.mulf %166, %169 : vector<1x4xf32>
    %171 = arith.addf %170, %159 : vector<1x4xf32>
    %172 = vector.extract_strided_slice %37 {offsets = [1, 0], sizes = [1, 4], strides = [1, 1]} : vector<2x4xf32> to vector<1x4xf32>
    %cst_46 = arith.constant 5.000000e-01 : f32
    %173 = vector.broadcast %cst_46 : f32 to vector<1x4xf32>
    %174 = arith.mulf %173, %165 : vector<1x4xf32>
    %175 = math.exp %174 : vector<1x4xf32>
    %176 = arith.mulf %172, %175 : vector<1x4xf32>
    %177 = arith.addf %176, %163 : vector<1x4xf32>
    %cst_47 = arith.constant 2.000000e+00 : f32
    %178 = vector.broadcast %cst_47 : f32 to vector<1x4xf32>
    %179 = arith.mulf %178, %161 : vector<1x4xf32>
    %180 = math.exp %179 : vector<1x4xf32>
    %cst_48 = arith.constant 2.000000e+00 : f32
    %181 = vector.broadcast %cst_48 : f32 to vector<1x4xf32>
    %182 = arith.mulf %181, %165 : vector<1x4xf32>
    %183 = math.exp %182 : vector<1x4xf32>
    %184 = arith.subf %159, %163 : vector<1x4xf32>
    %185 = arith.mulf %184, %184 : vector<1x4xf32>
    %186 = arith.subf %165, %161 : vector<1x4xf32>
    %187 = arith.addf %180, %185 : vector<1x4xf32>
    %cst_49 = arith.constant 2.000000e+00 : f32
    %188 = vector.broadcast %cst_49 : f32 to vector<1x4xf32>
    %189 = arith.mulf %188, %183 : vector<1x4xf32>
    %190 = arith.divf %187, %189 : vector<1x4xf32>
    %191 = arith.addf %186, %190 : vector<1x4xf32>
    %cst_50 = arith.constant 5.000000e-01 : f32
    %192 = vector.broadcast %cst_50 : f32 to vector<1x4xf32>
    %193 = arith.subf %191, %192 : vector<1x4xf32>
    %194 = arith.subf %161, %165 : vector<1x4xf32>
    %195 = arith.addf %183, %185 : vector<1x4xf32>
    %cst_51 = arith.constant 2.000000e+00 : f32
    %196 = vector.broadcast %cst_51 : f32 to vector<1x4xf32>
    %197 = arith.mulf %196, %180 : vector<1x4xf32>
    %198 = arith.divf %195, %197 : vector<1x4xf32>
    %199 = arith.addf %194, %198 : vector<1x4xf32>
    %cst_52 = arith.constant 5.000000e-01 : f32
    %200 = vector.broadcast %cst_52 : f32 to vector<1x4xf32>
    %201 = arith.subf %199, %200 : vector<1x4xf32>
    %202 = vector.shape_cast %193 : vector<1x4xf32> to vector<1x1x4xf32>
    %cst_53 = arith.constant dense<0.000000e+00> : vector<1xf32>
    %203 = vector.multi_reduction <add>, %202, %cst_53 [1, 2] : vector<1x1x4xf32> to vector<1xf32>
    %204 = vector.shape_cast %203 : vector<1xf32> to vector<1x1x1xf32>
    %205 = vector.extract %204[0, 0, 0] : f32 from vector<1x1x1xf32>
    %206 = vector.broadcast %205 : f32 to vector<1x1xf32>
    %207 = arith.addf %101, %206 : vector<1x1xf32>
    %208 = vector.shape_cast %201 : vector<1x4xf32> to vector<1x1x4xf32>
    %cst_54 = arith.constant dense<0.000000e+00> : vector<1xf32>
    %209 = vector.multi_reduction <add>, %208, %cst_54 [1, 2] : vector<1x1x4xf32> to vector<1xf32>
    %210 = vector.shape_cast %209 : vector<1xf32> to vector<1x1x1xf32>
    %211 = vector.extract %210[0, 0, 0] : f32 from vector<1x1x1xf32>
    %212 = vector.broadcast %211 : f32 to vector<1x1xf32>
    %213 = arith.addf %207, %212 : vector<1x1xf32>
    %cst_55 = arith.constant 0.000000e+00 : f32
    %214 = vector.broadcast %cst_55 : f32 to vector<1x4xf32>
    %215 = arith.subf %214, %171 : vector<1x4xf32>
    %216 = math.exp %215 : vector<1x4xf32>
    %cst_56 = arith.constant 1.000000e+00 : f32
    %217 = vector.broadcast %cst_56 : f32 to vector<1x4xf32>
    %218 = arith.addf %217, %216 : vector<1x4xf32>
    %cst_57 = arith.constant 1.000000e+00 : f32
    %219 = vector.broadcast %cst_57 : f32 to vector<1x4xf32>
    %220 = arith.divf %219, %218 : vector<1x4xf32>
    %cst_58 = arith.constant 0.000000e+00 : f32
    %221 = vector.broadcast %cst_58 : f32 to vector<1x4xf32>
    %222 = arith.subf %221, %177 : vector<1x4xf32>
    %223 = math.exp %222 : vector<1x4xf32>
    %cst_59 = arith.constant 1.000000e+00 : f32
    %224 = vector.broadcast %cst_59 : f32 to vector<1x4xf32>
    %225 = arith.addf %224, %223 : vector<1x4xf32>
    %cst_60 = arith.constant 1.000000e+00 : f32
    %226 = vector.broadcast %cst_60 : f32 to vector<1x4xf32>
    %227 = arith.divf %226, %225 : vector<1x4xf32>
    %228 = math.log %220 : vector<1x4xf32>
    %cst_61 = arith.constant -1.000000e+02 : f32
    %229 = vector.broadcast %cst_61 : f32 to vector<1x4xf32>
    %230 = arith.maximumf %228, %229 : vector<1x4xf32>
    %cst_62 = arith.constant 1.000000e+00 : f32
    %231 = vector.broadcast %cst_62 : f32 to vector<1x4xf32>
    %232 = arith.subf %231, %220 : vector<1x4xf32>
    %233 = math.log %232 : vector<1x4xf32>
    %cst_63 = arith.constant -1.000000e+02 : f32
    %234 = vector.broadcast %cst_63 : f32 to vector<1x4xf32>
    %235 = arith.maximumf %233, %234 : vector<1x4xf32>
    %236 = math.log %227 : vector<1x4xf32>
    %cst_64 = arith.constant -1.000000e+02 : f32
    %237 = vector.broadcast %cst_64 : f32 to vector<1x4xf32>
    %238 = arith.maximumf %236, %237 : vector<1x4xf32>
    %cst_65 = arith.constant 1.000000e+00 : f32
    %239 = vector.broadcast %cst_65 : f32 to vector<1x4xf32>
    %240 = arith.subf %239, %227 : vector<1x4xf32>
    %241 = math.log %240 : vector<1x4xf32>
    %cst_66 = arith.constant -1.000000e+02 : f32
    %242 = vector.broadcast %cst_66 : f32 to vector<1x4xf32>
    %243 = arith.maximumf %241, %242 : vector<1x4xf32>
    %244 = arith.mulf %227, %230 : vector<1x4xf32>
    %cst_67 = arith.constant 1.000000e+00 : f32
    %245 = vector.broadcast %cst_67 : f32 to vector<1x4xf32>
    %246 = arith.subf %245, %227 : vector<1x4xf32>
    %247 = arith.mulf %246, %235 : vector<1x4xf32>
    %248 = arith.addf %244, %247 : vector<1x4xf32>
    %249 = vector.shape_cast %248 : vector<1x4xf32> to vector<1x1x4xf32>
    %cst_68 = arith.constant dense<0.000000e+00> : vector<1xf32>
    %250 = vector.multi_reduction <add>, %249, %cst_68 [1, 2] : vector<1x1x4xf32> to vector<1xf32>
    %251 = vector.shape_cast %250 : vector<1xf32> to vector<1x1x1xf32>
    %252 = vector.extract %251[0, 0, 0] : f32 from vector<1x1x1xf32>
    %253 = vector.broadcast %252 : f32 to vector<1x1xf32>
    %254 = arith.subf %142, %253 : vector<1x1xf32>
    %255 = arith.mulf %220, %238 : vector<1x4xf32>
    %cst_69 = arith.constant 1.000000e+00 : f32
    %256 = vector.broadcast %cst_69 : f32 to vector<1x4xf32>
    %257 = arith.subf %256, %220 : vector<1x4xf32>
    %258 = arith.mulf %257, %243 : vector<1x4xf32>
    %259 = arith.addf %255, %258 : vector<1x4xf32>
    %260 = vector.shape_cast %259 : vector<1x4xf32> to vector<1x1x4xf32>
    %cst_70 = arith.constant dense<0.000000e+00> : vector<1xf32>
    %261 = vector.multi_reduction <add>, %260, %cst_70 [1, 2] : vector<1x1x4xf32> to vector<1xf32>
    %262 = vector.shape_cast %261 : vector<1xf32> to vector<1x1x1xf32>
    %263 = vector.extract %262[0, 0, 0] : f32 from vector<1x1x1xf32>
    %264 = vector.broadcast %263 : f32 to vector<1x1xf32>
    %265 = arith.subf %153, %264 : vector<1x1xf32>
    %cst_71 = arith.constant 2.000000e+00 : f32
    %266 = vector.broadcast %cst_71 : f32 to vector<1x1xf32>
    %267 = arith.divf %213, %266 : vector<1x1xf32>
    %268 = arith.addf %254, %265 : vector<1x1xf32>
    %269 = arith.divf %267, %268 : vector<1x1xf32>
    %cst_72 = arith.constant 1.000000e+00 : f32
    %270 = vector.broadcast %cst_72 : f32 to vector<1x1xf32>
    %271 = arith.subf %270, %269 : vector<1x1xf32>
    %272 = vector.shape_cast %271 : vector<1x1xf32> to vector<1x1xf32>
    %273 = vector.broadcast %272 : vector<1x1xf32> to vector<1x128xf32>
    %c0_73 = arith.constant 0 : index
    %c0_74 = arith.constant 0 : index
    %274 = vector.load %arg7[%c0_73, %c0_74] : memref<1x128xf32, #tpu.memory_space<vmem>>, vector<1x128xf32>
    tpu.vector_store %arg7[%c0_73, %c0_74], %273 {strides = array<i32>} : memref<1x128xf32, #tpu.memory_space<vmem>>, vector<1x128xf32>,
    return
  }
  func.func @transform_0(%arg0: i32) -> (i32, i32) {
    %c0_i32 = arith.constant 0 : i32
    %c0_i32_0 = arith.constant 0 : i32
    %c0_i32_1 = arith.constant 0 : i32
    return %c0_i32, %c0_i32_0 : i32, i32
  }
  func.func @transform_1(%arg0: i32) -> (i32, i32) {
    %c0_i32 = arith.constant 0 : i32
    %c0_i32_0 = arith.constant 0 : i32
    %c0_i32_1 = arith.constant 0 : i32
    return %c0_i32, %c0_i32_0 : i32, i32
  }
  func.func @transform_2(%arg0: i32) -> (i32, i32) {
    %c0_i32 = arith.constant 0 : i32
    %c0_i32_0 = arith.constant 0 : i32
    %c0_i32_1 = arith.constant 0 : i32
    return %c0_i32, %c0_i32_0 : i32, i32
  }
  func.func @transform_3(%arg0: i32) -> (i32, i32) {
    %c0_i32 = arith.constant 0 : i32
    %c0_i32_0 = arith.constant 0 : i32
    %c0_i32_1 = arith.constant 0 : i32
    return %c0_i32, %c0_i32_0 : i32, i32
  }
  func.func @transform_4(%arg0: i32) -> (i32, i32) {
    %c0_i32 = arith.constant 0 : i32
    %c0_i32_0 = arith.constant 0 : i32
    %c0_i32_1 = arith.constant 0 : i32
    return %c0_i32, %c0_i32_0 : i32, i32
  }
  func.func @transform_5(%arg0: i32) -> (i32, i32) {
    %c0_i32 = arith.constant 0 : i32
    %c0_i32_0 = arith.constant 0 : i32
    %c0_i32_1 = arith.constant 0 : i32
    return %c0_i32, %c0_i32_0 : i32, i32
  }
  func.func @transform_6(%arg0: i32) -> (i32, i32) {
    %c0_i32 = arith.constant 0 : i32
    %c0_i32_0 = arith.constant 0 : i32
    %c0_i32_1 = arith.constant 0 : i32
    return %c0_i32, %c0_i32_0 : i32, i32
  }
}

</mosaic_0001>

<bundles_post_ra>
// kernel: mutual_info_forward.1
= control target key start
LH: loop header
LB: loop body
LE: loop exit
PB: predicated region body
PF: predicated region fallthrough
CT: control target
= control target key end

     0   :  { %s3403_s0 = inlined_call_operand.vmem [shape: bf16[128,128], index: 0, kind: input, shape index: {}]   ;;  %s3404_s1 = inlined_call_operand.vmem [shape: bf16[128,32], index: 1, kind: input, shape index: {}]   ;;  %s3405_s2 = inlined_call_operand.vmem [shape: bf16[32,1024], index: 2, kind: input, shape index: {}]   ;;  %s3406_s3 = inlined_call_operand.vmem [shape: f32[1,16], index: 3, kind: input, shape index: {}]   ;;  %s3407_s4 = inlined_call_operand.vmem [shape: f32[2,4], index: 4, kind: input, shape index: {}]   ;;  %s3408_s5 = inlined_call_operand.vmem [shape: f32[2,4], index: 5, kind: input, shape index: {}]   ;;  %s3409_s6 = inlined_call_operand.hbm [shape: f32[1,128], index: 6, kind: output, shape index: {}]  }
   0x1   :  { %v2048_v0 = vld [vmem:[%s3404_s1] sm:$0xff]   ;;  %v2049_v1 = vld [vmem:[%s3404_s1 + $0x8] sm:$0xff]   ;;  %v2050_v2 = vld [vmem:[%s3404_s1 + $0x10] sm:$0xff]  }
   0x2   :  { %1985 = vmatprep.subr.bf16.mxu0 %v2048_v0  ;;  %v2051_v3 = vld [vmem:[%s3404_s1 + $0x18] sm:$0xff]   ;;  %v2056_v4 = vld [vmem:[%s3403_s0] sm:$0xff]   ;;  %v2053_v6 = vld [vmem:[%s3404_s1 + $0x28] sm:$0xff]  }
   0x3   :  { %1986 = vmatpush3.bf16.msra.mxu0 %v2048_v0  ;;  %2001 = vmatprep.mubr.bf16.mxu0 %v2056_v4  ;;  %v2052_v5 = vld [vmem:[%s3404_s1 + $0x20] sm:$0xff]  }
   0x4   :  { %1987 = vmatprep.subr.bf16.mxu0 %v2049_v1 }
   0x7   :  { %1988 = vmatpush3.bf16.msra.mxu0 %v2049_v1 }
   0x8   :  { %1989 = vmatprep.subr.bf16.mxu0 %v2050_v2 }
   0xb   :  { %1990 = vmatpush3.bf16.msra.mxu0 %v2050_v2 }
   0xc   :  { %1991 = vmatprep.subr.bf16.mxu0 %v2051_v3 }
   0xf   :  { %1992 = vmatpush3.bf16.msra.mxu0 %v2051_v3 }
  0x10   :  { %1993 = vmatprep.subr.bf16.mxu0 %v2052_v5 }
  0x11   :  { %11 = vsyncpa [#allocation3], 0  ;;  %v2054_v7 = vld [vmem:[%s3404_s1 + $0x30] sm:$0xff]   ;;  %v2055_v8 = vld [vmem:[%s3404_s1 + $0x38] sm:$0xff]   ;;  %v2142_v32 = vmov 0   ;;  %vm386_vm0 = vcmask 261120  }
  0x12   :  { %v2057_v9 = vld [vmem:[%s3403_s0 + $0x8] sm:$0xff]   ;;  %v2058_v10 = vld [vmem:[%s3403_s0 + $0x10] sm:$0xff]   ;;  %v2059_v11 = vld [vmem:[%s3403_s0 + $0x18] sm:$0xff]   ;;  %443 = vmatprep.mubr.bf16.mxu1 %v2142_v32  ;;  %s2144_s10 = smov 96   ;;  %s2145_s11 = smov 112  }
  0x13   :  { %1994 = vmatpush3.bf16.msra.mxu0 %v2052_v5  ;;  %v2060_v12 = vld [vmem:[%s3403_s0 + $0x20] sm:$0xff]   ;;  %v2061_v13 = vld [vmem:[%s3403_s0 + $0x28] sm:$0xff]   ;;  %v2062_v14 = vld [vmem:[%s3403_s0 + $0x30] sm:$0xff]   ;;  %s2147_s13 = smov 8   ;;  %s2148_s14 = smov 12  }
  0x14   :  { %1995 = vmatprep.subr.bf16.mxu0 %v2053_v6  ;;  %v2063_v15 = vld [vmem:[%s3403_s0 + $0x38] sm:$0xff]   ;;  %v290_v16 = vld [vmem:[%s3405_s2] sm:$0xff]  ;;  %v291_v18 = vld [vmem:[%s3405_s2 + $0x8] sm:$0xff]  ;;  %s2149_s15 = smov 4   ;;  %s2150_s16 = smov 116  }
  0x15   :  { %v294_v17 = vld [vmem:[%s3405_s2 + $0x20] sm:$0xff]  ;;  %v295_v20 = vld [vmem:[%s3405_s2 + $0x28] sm:$0xff]  ;;  %v293_v33 = vld [vmem:[%s3405_s2 + $0x18] sm:$0xff]  ;;  %s2151_s17 = smov 124   ;;  %s2152_s27 = smov [#allocation2]  }
  0x16   :  { %v1918_v19 = vcombine.high %v290_v16, %v294_v17  ;;  %v1917_v21 = vcombine.low %v290_v16, %v294_v17  ;;  %v1919_v22 = vcombine.low %v291_v18, %v295_v20  ;;  %v1920_v23 = vcombine.high %v291_v18, %v295_v20  ;;  %v298_v24 = vld [vmem:[%s3405_s2 + $0x40] sm:$0xff]  ;;  %v299_v26 = vld [vmem:[%s3405_s2 + $0x48] sm:$0xff]  ;;  %v297_v34 = vld [vmem:[%s3405_s2 + $0x38] sm:$0xff]  ;;  %s1893_s28 = sshll.u32 %s2152_s27, 4  ;;  %s1894_s28 = int_to_ptr.vmem [resolvable:$true] %s1893_s28 }
  0x17   :  { %1996 = vmatpush3.bf16.msra.mxu0 %v2053_v6  ;;  %v302_v25 = vld [vmem:[%s3405_s2 + $0x60] sm:$0xff]  ;;  %v303_v28 = vld [vmem:[%s3405_s2 + $0x68] sm:$0xff]  ;;  %v1924_v35 = vcombine.high %v293_v33, %v297_v34  ;;  %v1923_v36 = vcombine.low %v293_v33, %v297_v34  ;;  %v301_v50 = vld [vmem:[%s3405_s2 + $0x58] sm:$0xff]  ;;  %s2118_s29 = scalar_lea.vmem %s1894_s28, 16  ;;  %s2122_s30 = scalar_lea.vmem %s1894_s28, 32 }
  0x18   :  { %1997 = vmatprep.subr.bf16.mxu0 %v2054_v7  ;;  %411 = vmatprep.subr.bf16.mxu1 %v1918_v19  ;;  %v1926_v27 = vcombine.high %v298_v24, %v302_v25  ;;  %v1925_v29 = vcombine.low %v298_v24, %v302_v25  ;;  %v1927_v30 = vcombine.low %v299_v26, %v303_v28  ;;  %v305_v51 = vld [vmem:[%s3405_s2 + $0x78] sm:$0xff]  ;;  %v2281_v56 = vld [vmem:[%s3405_s2 + $0x10] sm:$0xff]  ;;  %p2119_p0 = scmp.ne.s32.totalorder %s1894_s28, %s2118_s29  ;;  %p2123_p1 = scmp.lt.s32.totalorder %s1894_s28, %s1894_s28 }
  0x19   :  { %412 = vmatpush1.bf16.msra.mxu1 %v1917_v21  ;;  %v1928_v31 = vcombine.high %v299_v26, %v303_v28  ;;  %v2286_v57 = vld [vmem:[%s3405_s2 + $0x30] sm:$0xff]  ;;  %v1932_v60 = vcombine.high %v301_v50, %v305_v51  ;;  %v1931_v4 = vcombine.low %v301_v50, %v305_v51  ;;  %p2124_p2 = scmp.lt.s32.totalorder %s2122_s30, %s2118_s29 }
  0x1a   :  { %413 = vmatprep.subr.bf16.mxu1 %v1926_v27  ;;  %v1922_v2 = vcombine.high %v2281_v56, %v2286_v57 }
  0x1b   :  { %1998 = vmatpush3.bf16.msra.mxu0 %v2054_v7  ;;  %p2125_p3 = por %p2124_p2, %p2123_p1 }
  0x1c   :  { %1999 = vmatprep.subr.bf16.mxu0 %v2055_v8 }
  0x1d   :  { %414 = vmatpush1.bf16.msra.mxu1 %v1925_v29  ;;  %p2126_p4 = pnand %p2125_p3, %p2119_p0 }
  0x1e   :  { %2017 = vmatprep.subr.bf16.mxu1 %v1920_v23 }
  0x1f   :  { %2000 = vmatpush3.bf16.msra.mxu0 %v2055_v8 }
  0x20   :  { %524 = vmatprep.subr.bf16.mxu0 %v1920_v23 }
  0x22   :  { %2002 = vmatmul.mubr.bf16.vlgmr.msra.gmra.mrb[0].mxu0 %v2057_v9 }
  0x23   :  { %2005 = vmatprep.mubr.bf16.mxu0 %v2058_v10  ;;  %525 = vmatpush1.bf16.msra.mxu0 %v1919_v22 }
  0x24   :  { %526 = vmatprep.subr.bf16.mxu0 %v1928_v31 }
  0x27   :  { %527 = vmatpush1.bf16.msra.mxu0 %v1927_v30 }
  0x28   :  { %750 = vmatprep.subr.bf16.mxu0 %v1924_v35 }
  0x2a   :  { %2006 = vmatmul.mubr.bf16.gmra.mrb[4].mxu0 %v2059_v11 }
  0x2b   :  { %2009 = vmatprep.mubr.bf16.mxu0 %v2060_v12 }
  0x32   :  { %2010 = vmatmul.mubr.bf16.gmra.mrb[8].mxu0 %v2061_v13 }
  0x33   :  { %2013 = vmatprep.mubr.bf16.mxu0 %v2062_v14 }
  0x3a   :  { %2014 = vmatmul.mubr.bf16.gmra.mrb[12].mxu0 %v2063_v15 }
  0x3b   :  { %556 = vmatprep.mubr.bf16.mxu0 %v2142_v32 }
  0xf5   :  { %v2003_v37 = vpop.f32.mrb[0].mxu0 }
  0xf6   :  { %v252_v38 = vmul.f32 0.01, %v2003_v37  ;;  %v187_v39 = vpop.f32.mrb[1].mxu0 }
  0xf7   :  { %v250_v40 = vmul.f32 0.01, %v187_v39  ;;  %v2004_v41 = vpop.f32.mrb[2].mxu0 }
  0xf8   :  { %v253_v42 = vmul.f32 0.01, %v2004_v41  ;;  %v190_v43 = vpop.f32.mrb[3].mxu0  ;;  %v268_v45 = vmax.f32 %v2003_v37, %v252_v38  ;;  %v300_v37 = vld [vmem:[%s3405_s2 + $0x50] sm:$0xff] }
  0xf9   :  { %v251_v44 = vmul.f32 0.01, %v190_v43  ;;  %v266_v47 = vmax.f32 %v187_v39, %v250_v40  ;;  %v304_v38 = vld [vmem:[%s3405_s2 + $0x70] sm:$0xff]  ;;  %v1921_v39 = vcombine.low %v2281_v56, %v2286_v57  ;;  %s2143_s2 = smov 64  }
  0xfa   :  { %v269_v46 = vmax.f32 %v2004_v41, %v253_v42  ;;  %v1930_v40 = vcombine.high %v300_v37, %v304_v38  ;;  %v1929_v41 = vcombine.low %v300_v37, %v304_v38 }
  0xfb   :  { %v267_v48 = vmax.f32 %v190_v43, %v251_v44 }
  0xfc   :  { %v2268_v49 = vpack.c.bf16 %v269_v46, %v268_v45 }
  0xfd   :  { %v2276_v52 = vpack.c.bf16 %v267_v48, %v266_v47  ;;  %v2007_v53 = vpop.f32.mrb[4].mxu0 }
  0xfe   :  { %v256_v54 = vmul.f32 0.01, %v2007_v53  ;;  %v203_v55 = vpop.f32.mrb[5].mxu0 }
  0xff   :  { %1933 = vmatmul.mubr.msk.bf16.vlgmr.msra.gmra.mrb[0].mxu1 %vm386_vm0, %v2276_v52  ;;  %1941 = vmatmul.mubr.msk.bf16.vlgmr.msra.gmra.mrb[16].mxu0 %vm386_vm0, %v2276_v52  ;;  %v254_v58 = vmul.f32 0.01, %v203_v55  ;;  %v2008_v59 = vpop.f32.mrb[6].mxu0 }
 0x100   :  { %2019 = vmatpush1.bf16.msra.mxu1 %v1919_v22  ;;  %v272_v61 = vmax.f32 %v2007_v53, %v256_v54  ;;  %v257_v62 = vmul.f32 0.01, %v2008_v59  ;;  %v206_v63 = vpop.f32.mrb[7].mxu0  ;;  %453 = vmatprep.mubr.bf16.mxu1 %v2142_v32 }
 0x101   :  { %v270_v0 = vmax.f32 %v203_v55, %v254_v58  ;;  %v255_v1 = vmul.f32 0.01, %v206_v63  ;;  %566 = vmatprep.mubr.bf16.mxu0 %v2142_v32  ;;  %2018 = vmatprep.subr.bf16.mxu1 %v1928_v31 }
 0x102   :  { %v273_v3 = vmax.f32 %v2008_v59, %v257_v62  ;;  %751 = vmatpush1.bf16.msra.mxu0 %v1923_v36 }
 0x103   :  { %v271_v5 = vmax.f32 %v206_v63, %v255_v1  ;;  %752 = vmatprep.subr.bf16.mxu0 %v1932_v60  ;;  %v863_v1 = vlaneseq }
 0x104   :  { %v2296_v6 = vpack.c.bf16 %v273_v3, %v272_v61  ;;  %2020 = vmatpush1.bf16.msra.mxu1 %v1927_v30 }
 0x105   :  { %v2298_v7 = vpack.c.bf16 %v271_v5, %v270_v0  ;;  %v2011_v8 = vpop.f32.mrb[8].mxu0  ;;  %637 = vmatprep.subr.bf16.mxu1 %v1922_v2 }
 0x106   :  { %v260_v9 = vmul.f32 0.01, %v2011_v8  ;;  %v219_v10 = vpop.f32.mrb[9].mxu0  ;;  %753 = vmatpush1.bf16.msra.mxu0 %v1931_v4 }
 0x107   :  { %1934 = vmatmul.mubr.msk.bf16.gmra.mrb[4].mxu1 %vm386_vm0, %v2268_v49  ;;  %1942 = vmatmul.mubr.msk.bf16.gmra.mrb[20].mxu0 %vm386_vm0, %v2268_v49  ;;  %v258_v11 = vmul.f32 0.01, %v219_v10  ;;  %v2012_v12 = vpop.f32.mrb[10].mxu0 }
 0x108   :  { %463 = vmatprep.mubr.bf16.mxu1 %v2142_v32  ;;  %576 = vmatprep.mubr.bf16.mxu0 %v2142_v32  ;;  %v276_v13 = vmax.f32 %v2011_v8, %v260_v9  ;;  %v261_v14 = vmul.f32 0.01, %v2012_v12  ;;  %v222_v15 = vpop.f32.mrb[11].mxu0 }
 0x109   :  { %v274_v16 = vmax.f32 %v219_v10, %v258_v11  ;;  %v259_v17 = vmul.f32 0.01, %v222_v15  ;;  %v2458_v11 = vshrl.u32 %v863_v1, 7 }
 0x10a   :  { %v277_v18 = vmax.f32 %v2012_v12, %v261_v14 }
 0x10b   :  { %v275_v19 = vmax.f32 %v222_v15, %v259_v17 }
 0x10c   :  { %v2306_v20 = vpack.c.bf16 %v277_v18, %v276_v13 }
 0x10d   :  { %v2308_v21 = vpack.c.bf16 %v275_v19, %v274_v16  ;;  %v2015_v22 = vpop.f32.mrb[12].mxu0  ;;  %v865_v16 = vadd.s32 8, %v2458_v11 }
 0x10e   :  { %v264_v23 = vmul.f32 0.01, %v2015_v22  ;;  %v235_v24 = vpop.f32.mrb[13].mxu0 }
 0x10f   :  { %1935 = vmatmul.mubr.msk.bf16.gmra.mrb[8].mxu1 %vm386_vm0, %v2298_v7  ;;  %1943 = vmatmul.mubr.msk.bf16.gmra.mrb[24].mxu0 %vm386_vm0, %v2298_v7  ;;  %v262_v25 = vmul.f32 0.01, %v235_v24  ;;  %v2016_v26 = vpop.f32.mrb[14].mxu0 }
 0x110   :  { %473 = vmatprep.mubr.bf16.mxu1 %v2142_v32  ;;  %586 = vmatprep.mubr.bf16.mxu0 %v2142_v32  ;;  %v280_v27 = vmax.f32 %v2015_v22, %v264_v23  ;;  %v265_v28 = vmul.f32 0.01, %v2016_v26  ;;  %v238_v29 = vpop.f32.mrb[15].mxu0 }
 0x111   :  { %v278_v30 = vmax.f32 %v235_v24, %v262_v25  ;;  %v263_v31 = vmul.f32 0.01, %v238_v29 }
 0x112   :  { %v281_v33 = vmax.f32 %v2016_v26, %v265_v28 }
 0x113   :  { %v279_v34 = vmax.f32 %v238_v29, %v263_v31  ;;  %v866_v31 = vadd.s32 16, %v2458_v11 }
 0x114   :  { %v289_v35 = vpack.c.bf16 %v281_v33, %v280_v27  ;;  %v867_v33 = vadd.s32 24, %v2458_v11 }
 0x115   :  { %v288_v36 = vpack.c.bf16 %v279_v34, %v278_v30  ;;  %v2492_v30 = vand.u32 63, %v865_v16 }
 0x117   :  { %1936 = vmatmul.mubr.msk.bf16.gmra.mrb[12].mxu1 %vm386_vm0, %v2296_v6  ;;  %1944 = vmatmul.mubr.msk.bf16.gmra.mrb[28].mxu0 %vm386_vm0, %v2296_v6 }
 0x118   :  { %483 = vmatprep.mubr.bf16.mxu1 %v2142_v32  ;;  %596 = vmatprep.mubr.bf16.mxu0 %v2142_v32 }
 0x11f   :  { %1937 = vmatmul.mubr.msk.bf16.gmra.mrb[16].mxu1 %vm386_vm0, %v2308_v21  ;;  %1945 = vmatmul.mubr.msk.bf16.gmra.mrb[32].mxu0 %vm386_vm0, %v2308_v21 }
 0x120   :  { %493 = vmatprep.mubr.bf16.mxu1 %v2142_v32  ;;  %782 = vmatprep.mubr.bf16.mxu0 %v2142_v32 }
 0x127   :  { %1938 = vmatmul.mubr.msk.bf16.gmra.mrb[20].mxu1 %vm386_vm0, %v2306_v20  ;;  %1957 = vmatmul.mubr.msk.bf16.vlgmr.msra.gmra.mrb[36].mxu0 %vm386_vm0, %v2276_v52 }
 0x128   :  { %503 = vmatprep.mubr.bf16.mxu1 %v2142_v32  ;;  %792 = vmatprep.mubr.bf16.mxu0 %v2142_v32 }
 0x12f   :  { %1939 = vmatmul.mubr.msk.bf16.gmra.mrb[24].mxu1 %vm386_vm0, %v288_v36  ;;  %1958 = vmatmul.mubr.msk.bf16.gmra.mrb[40].mxu0 %vm386_vm0, %v2268_v49 }
 0x130   :  { %513 = vmatprep.mubr.bf16.mxu1 %v2142_v32  ;;  %802 = vmatprep.mubr.bf16.mxu0 %v2142_v32 }
 0x137   :  { %1940 = vmatmul.mubr.msk.bf16.gmra.mrb[28].mxu1 %vm386_vm0, %v289_v35  ;;  %1959 = vmatmul.mubr.msk.bf16.gmra.mrb[44].mxu0 %vm386_vm0, %v2298_v7 }
 0x138   :  { %606 = vmatprep.mubr.bf16.mxu1 %v2142_v32  ;;  %812 = vmatprep.mubr.bf16.mxu0 %v2142_v32 }
 0x13f   :  { %1946 = vmatmul.mubr.msk.bf16.vlgmr.msra.gmra.mrb[32].mxu1 %vm386_vm0, %v2306_v20  ;;  %1960 = vmatmul.mubr.msk.bf16.gmra.mrb[48].mxu0 %vm386_vm0, %v2296_v6 }
 0x140   :  { %638 = vmatpush1.bf16.msra.mxu1 %v1921_v39  ;;  %616 = vmatprep.mubr.bf16.mxu1 %v2142_v32 }
 0x141   :  { %822 = vmatprep.mubr.bf16.mxu0 %v2142_v32  ;;  %639 = vmatprep.subr.bf16.mxu1 %v1930_v40 }
 0x144   :  { %640 = vmatpush1.bf16.msra.mxu1 %v1929_v41  ;;  %v2518_v41 = vand.u32 63, %v866_v31  ;;  %v2536_v31 = vand.u32 63, %v867_v33 }
 0x147   :  { %1947 = vmatmul.mubr.msk.bf16.gmra.mrb[36].mxu1 %vm386_vm0, %v288_v36  ;;  %1961 = vmatmul.mubr.msk.bf16.gmra.mrb[52].mxu0 %vm386_vm0, %v2308_v21 }
 0x148   :  { %626 = vmatprep.mubr.bf16.mxu1 %v2142_v32  ;;  %832 = vmatprep.mubr.bf16.mxu0 %v2142_v32 }
 0x14f   :  { %1948 = vmatmul.mubr.msk.bf16.gmra.mrb[40].mxu1 %vm386_vm0, %v289_v35  ;;  %1962 = vmatmul.mubr.msk.bf16.gmra.mrb[56].mxu0 %vm386_vm0, %v2306_v20 }
 0x150   :  { %669 = vmatprep.mubr.bf16.mxu1 %v2142_v32  ;;  %842 = vmatprep.mubr.bf16.mxu0 %v2142_v32 }
 0x157   :  { %1949 = vmatmul.mubr.msk.bf16.vlgmr.msra.gmra.mrb[44].mxu1 %vm386_vm0, %v2276_v52  ;;  %1963 = vmatmul.mubr.msk.bf16.gmra.mrb[60].mxu0 %vm386_vm0, %v288_v36 }
 0x158   :  { %679 = vmatprep.mubr.bf16.mxu1 %v2142_v32  ;;  %852 = vmatprep.mubr.bf16.mxu0 %v2142_v32 }
 0x15f   :  { %1950 = vmatmul.mubr.msk.bf16.gmra.mrb[48].mxu1 %vm386_vm0, %v2268_v49  ;;  %1964 = vmatmul.mubr.msk.bf16.gmra.mrb[64].mxu0 %vm386_vm0, %v289_v35 }
 0x160   :  { %689 = vmatprep.mubr.bf16.mxu1 %v2142_v32 }
 0x167   :  { %1951 = vmatmul.mubr.msk.bf16.gmra.mrb[52].mxu1 %vm386_vm0, %v2298_v7 }
 0x168   :  { %699 = vmatprep.mubr.bf16.mxu1 %v2142_v32 }
 0x16f   :  { %1952 = vmatmul.mubr.msk.bf16.gmra.mrb[56].mxu1 %vm386_vm0, %v2296_v6  ;;  %v2448_v6 = vand.u32 127, %v863_v1 }
 0x170   :  { %709 = vmatprep.mubr.bf16.mxu1 %v2142_v32 }
 0x171   :  { %v899_v12 = vadd.s32 256, %v2448_v6  ;;  %v903_v13 = vadd.s32 768, %v2448_v6  ;;  %v900_v14 = vadd.s32 384, %v2448_v6  ;;  %v904_v15 = vadd.s32 896, %v2448_v6 }
 0x173   :  { %v2476_v22 = vshra.s32 %v899_v12, 4  ;;  %v2482_v25 = vshra.s32 %v903_v13, 4  ;;  %v2484_v26 = vshra.s32 %v900_v14, 4  ;;  %v2490_v29 = vshra.s32 %v904_v15, 4 }
 0x175   :  { %vm923_vm5 = vcmp.eq.s32.totalorder %v2492_v30, %v2476_v22  ;;  %vm927_vm6 = vcmp.eq.s32.totalorder %v2492_v30, %v2482_v25  ;;  %vm924_vm7 = vcmp.eq.s32.totalorder %v2492_v30, %v2484_v26  ;;  %vm928_vm8 = vcmp.eq.s32.totalorder %v2492_v30, %v2490_v29 }
 0x176   :  { %vm931_vm9 = vcmp.eq.s32.totalorder %v2518_v41, %v2476_v22  ;;  %vm935_vm10 = vcmp.eq.s32.totalorder %v2518_v41, %v2482_v25  ;;  %vm932_vm11 = vcmp.eq.s32.totalorder %v2518_v41, %v2484_v26  ;;  %vm936_vm12 = vcmp.eq.s32.totalorder %v2518_v41, %v2490_v29 }
 0x177   :  { %1953 = vmatmul.mubr.msk.bf16.gmra.mrb[60].mxu1 %vm386_vm0, %v2308_v21  ;;  %v2474_v21 = vand.u32 63, %v2458_v11  ;;  %vm939_vm13 = vcmp.eq.s32.totalorder %v2536_v31, %v2476_v22  ;;  %vm943_vm14 = vcmp.eq.s32.totalorder %v2536_v31, %v2482_v25  ;;  %vm940_vm15 = vcmp.eq.s32.totalorder %v2536_v31, %v2484_v26 }
 0x178   :  { %719 = vmatprep.mubr.bf16.mxu1 %v2142_v32 }
 0x179   :  { %vm915_vm1 = vcmp.eq.s32.totalorder %v2474_v21, %v2476_v22  ;;  %vm919_vm2 = vcmp.eq.s32.totalorder %v2474_v21, %v2482_v25  ;;  %vm916_vm3 = vcmp.eq.s32.totalorder %v2474_v21, %v2484_v26  ;;  %vm920_vm4 = vcmp.eq.s32.totalorder %v2474_v21, %v2490_v29 }
 0x17f   :  { %1954 = vmatmul.mubr.msk.bf16.gmra.mrb[64].mxu1 %vm386_vm0, %v2306_v20 }
 0x180   :  { %729 = vmatprep.mubr.bf16.mxu1 %v2142_v32 }
 0x187   :  { %1955 = vmatmul.mubr.msk.bf16.gmra.mrb[68].mxu1 %vm386_vm0, %v288_v36 }
 0x188   :  { %739 = vmatprep.mubr.bf16.mxu1 %v2142_v32 }
 0x18f   :  { %1956 = vmatmul.mubr.msk.bf16.gmra.mrb[72].mxu1 %vm386_vm0, %v289_v35  ;;  %vm944_vm0 = vcmp.eq.s32.totalorder %v2536_v31, %v2490_v29 }
 0x1d2   :  { %v2392_v42 = vpop.f32.mrb[0].mxu1  ;;  %v2394_v43 = vpop.f32.mrb[16].mxu0 }
 0x1d3   :  { %v2396_v44 = vpop.f32.mrb[1].mxu1  ;;  %v2398_v45 = vpop.f32.mrb[17].mxu0  ;;  %v1043_v36 = vsel %vm915_vm1, %v2394_v43, 0.0 }
 0x1d4   :  { %v2400_v46 = vpop.f32.mrb[2].mxu1  ;;  %v2402_v47 = vpop.f32.mrb[18].mxu0  ;;  %v1044_v40 = vsel %vm916_vm3, %v2398_v45, 0.0 }
 0x1d5   :  { %v2404_v48 = vpop.f32.mrb[3].mxu1  ;;  %v2406_v49 = vpop.f32.mrb[19].mxu0  ;;  %v1051_v14 = vsel %vm923_vm5, %v2402_v47, 0.0  ;;  %v868_v47 = vadd.s32 32, %v2458_v11 }
 0x1d6   :  { %v1052_v45 = vsel %vm924_vm7, %v2406_v49, 0.0  ;;  %v869_v49 = vadd.s32 40, %v2458_v11 }
 0x1da   :  { %v2408_v50 = vpop.f32.mrb[4].mxu1  ;;  %v2410_v32 = vpop.f32.mrb[20].mxu0 }
 0x1db   :  { %v2412_v51 = vpop.f32.mrb[5].mxu1  ;;  %v2414_v52 = vpop.f32.mrb[21].mxu0 }
 0x1dc   :  { %v2416_v53 = vpop.f32.mrb[6].mxu1  ;;  %v2418_v54 = vpop.f32.mrb[22].mxu0 }
 0x1dd   :  { %v2420_v55 = vpop.f32.mrb[7].mxu1  ;;  %v2422_v56 = vpop.f32.mrb[23].mxu0 }
 0x1e2   :  { %v2424_v57 = vpop.f32.mrb[8].mxu1  ;;  %v2426_v58 = vpop.f32.mrb[24].mxu0 }
 0x1e3   :  { %v2428_v59 = vpop.f32.mrb[9].mxu1  ;;  %v2430_v60 = vpop.f32.mrb[25].mxu0 }
 0x1e4   :  { %v2432_v61 = vpop.f32.mrb[10].mxu1  ;;  %v2434_v62 = vpop.f32.mrb[26].mxu0 }
 0x1e5   :  { %v2436_v63 = vpop.f32.mrb[11].mxu1  ;;  %v2438_v0 = vpop.f32.mrb[27].mxu0 }
 0x1ea   :  { %v2440_v2 = vpop.f32.mrb[12].mxu1  ;;  %v2442_v3 = vpop.f32.mrb[28].mxu0 }
 0x1eb   :  { %3418 = vst [vmem:[#allocation5_spill] sm:$0xff] %v2440_v2  ;;  %v2444_v4 = vpop.f32.mrb[13].mxu1  ;;  %v2446_v5 = vpop.f32.mrb[29].mxu0 }
 0x1ec   :  { %3419 = vst [vmem:[#allocation6_spill] sm:$0xff] %v2444_v4  ;;  %v2450_v7 = vpop.f32.mrb[14].mxu1  ;;  %v2452_v8 = vpop.f32.mrb[30].mxu0 }
 0x1ed   :  { %3420 = vst [vmem:[#allocation7_spill] sm:$0xff] %v2450_v7  ;;  %v2454_v9 = vpop.f32.mrb[15].mxu1  ;;  %v2456_v10 = vpop.f32.mrb[31].mxu0 }
 0x1ee   :  { %3421 = vst [vmem:[#allocation8_spill] sm:$0xff] %v2454_v9  ;;  %v874_v9 = vadd.s32 80, %v2458_v11 }
 0x1f2   :  { %v2465_v17 = vpop.f32.mrb[16].mxu1  ;;  %v2467_v18 = vpop.f32.mrb[32].mxu0 }
 0x1f3   :  { %3422 = vst [vmem:[#allocation9_spill] sm:$0xff] %v2465_v17  ;;  %v2469_v19 = vpop.f32.mrb[17].mxu1  ;;  %v2471_v20 = vpop.f32.mrb[33].mxu0 }
 0x1f4   :  { %3423 = vst [vmem:[#allocation10_spill] sm:$0xff] %v2469_v19  ;;  %v2478_v23 = vpop.f32.mrb[18].mxu1  ;;  %v2480_v24 = vpop.f32.mrb[34].mxu0 }
 0x1f5   :  { %3424 = vst [vmem:[#allocation11_spill] sm:$0xff] %v2478_v23  ;;  %v2486_v27 = vpop.f32.mrb[19].mxu1  ;;  %v2488_v28 = vpop.f32.mrb[35].mxu0 }
 0x1f6   :  { %3425 = vst [vmem:[#allocation12_spill] sm:$0xff] %v2486_v27 }
 0x1fa   :  { %v2506_v34 = vpop.f32.mrb[20].mxu1  ;;  %v784_v35 = vpop.f32.mrb[36].mxu0 }
 0x1fb   :  { %3426 = vst [vmem:[#allocation13_spill] sm:$0xff] %v2506_v34  ;;  %v1047_v37 = vsel %vm919_vm2, %v784_v35, 0.0  ;;  %v2513_v38 = vpop.f32.mrb[21].mxu1  ;;  %v786_v39 = vpop.f32.mrb[37].mxu0 }
 0x1fc   :  { %3427 = vst [vmem:[#allocation14_spill] sm:$0xff] %v2513_v38  ;;  %v2520_v1 = vadd.f32 %v1047_v37, %v1043_v36  ;;  %v1048_v12 = vsel %vm920_vm4, %v786_v39, 0.0  ;;  %v2522_v13 = vpop.f32.mrb[22].mxu1  ;;  %v788_v43 = vpop.f32.mrb[38].mxu0 }
 0x1fd   :  { %3428 = vst [vmem:[#allocation15_spill] sm:$0xff] %v2522_v13  ;;  %v2528_v15 = vadd.f32 %v1048_v12, %v1044_v40  ;;  %v1055_v16 = vsel %vm927_vm6, %v788_v43, 0.0  ;;  %v2530_v35 = vpop.f32.mrb[23].mxu1  ;;  %v790_v38 = vpop.f32.mrb[39].mxu0  ;;  %v1059_v40 = vsel %vm931_vm9, %v2410_v32, 0.0 }
 0x1fe   :  { %3429 = vst [vmem:[#allocation16_spill] sm:$0xff] %v2530_v35  ;;  %v2538_v36 = vadd.f32 %v1055_v16, %v1051_v14  ;;  %v1056_v37 = vsel %vm928_vm8, %v790_v38, 0.0  ;;  %v1060_v16 = vsel %vm932_vm11, %v2414_v52, 0.0  ;;  %v1068_v52 = vsel %vm940_vm15, %v2422_v56, 0.0 }
 0x1ff   :  { %v2540_v39 = vadd.f32 %v1056_v37, %v1052_v45  ;;  %v2566_v45 = vand.u32 63, %v868_v47  ;;  %v2584_v47 = vand.u32 63, %v869_v49  ;;  %v871_v56 = vadd.s32 56, %v2458_v11 }
 0x201   :  { %vm947_vm1 = vcmp.eq.s32.totalorder %v2566_v45, %v2476_v22  ;;  %vm951_vm2 = vcmp.eq.s32.totalorder %v2566_v45, %v2482_v25  ;;  %vm948_vm3 = vcmp.eq.s32.totalorder %v2566_v45, %v2484_v26  ;;  %vm952_vm4 = vcmp.eq.s32.totalorder %v2566_v45, %v2490_v29 }
 0x202   :  { %v2554_v33 = vpop.f32.mrb[24].mxu1  ;;  %v794_v38 = vpop.f32.mrb[40].mxu0  ;;  %vm955_vm5 = vcmp.eq.s32.totalorder %v2584_v47, %v2476_v22  ;;  %vm959_vm6 = vcmp.eq.s32.totalorder %v2584_v47, %v2482_v25  ;;  %v1075_v49 = vsel %vm947_vm1, %v2426_v58, 0.0  ;;  %vm956_vm7 = vcmp.eq.s32.totalorder %v2584_v47, %v2484_v26 }
 0x203   :  { %3430 = vst [vmem:[#allocation17_spill] sm:$0xff] %v2554_v33  ;;  %v1063_v12 = vsel %vm935_vm10, %v794_v38, 0.0  ;;  %v2561_v43 = vpop.f32.mrb[25].mxu1  ;;  %v796_v14 = vpop.f32.mrb[41].mxu0  ;;  %v1067_v38 = vsel %vm939_vm13, %v2418_v54, 0.0  ;;  %v870_v54 = vadd.s32 48, %v2458_v11  ;;  %vm960_vm8 = vcmp.eq.s32.totalorder %v2584_v47, %v2490_v29 }
 0x204   :  { %3431 = vst [vmem:[#allocation18_spill] sm:$0xff] %v2561_v43  ;;  %v2568_v37 = vadd.f32 %v1063_v12, %v1059_v40  ;;  %v1064_v33 = vsel %vm936_vm12, %v796_v14, 0.0  ;;  %v2570_v35 = vpop.f32.mrb[26].mxu1  ;;  %v798_v32 = vpop.f32.mrb[42].mxu0 }
 0x205   :  { %3432 = vst [vmem:[#allocation19_spill] sm:$0xff] %v2570_v35  ;;  %v2576_v43 = vadd.f32 %v1064_v33, %v1060_v16  ;;  %v1071_v13 = vsel %vm943_vm14, %v798_v32, 0.0  ;;  %v2578_v34 = vpop.f32.mrb[27].mxu1  ;;  %v800_v27 = vpop.f32.mrb[43].mxu0 }
 0x206   :  { %3433 = vst [vmem:[#allocation20_spill] sm:$0xff] %v2578_v34  ;;  %v2586_v40 = vadd.f32 %v1071_v13, %v1067_v38  ;;  %v1072_v12 = vsel %vm944_vm0, %v800_v27, 0.0  ;;  %v1076_v38 = vsel %vm948_vm3, %v2430_v60, 0.0  ;;  %v1084_v60 = vsel %vm956_vm7, %v2438_v0, 0.0 }
 0x207   :  { %v2588_v14 = vadd.f32 %v1072_v12, %v1068_v52  ;;  %v2614_v52 = vand.u32 63, %v870_v54  ;;  %v2632_v54 = vand.u32 63, %v871_v56  ;;  %v898_v0 = vadd.s32 128, %v2448_v6 }
 0x209   :  { %3436 = vst [vmem:[#allocation23_spill] sm:$0xff] %v2614_v52  ;;  %3439 = vst [vmem:[#allocation26_spill] sm:$0xff] %v2632_v54  ;;  %vm963_vm9 = vcmp.eq.s32.totalorder %v2614_v52, %v2476_v22  ;;  %vm967_vm10 = vcmp.eq.s32.totalorder %v2614_v52, %v2482_v25  ;;  %vm964_vm11 = vcmp.eq.s32.totalorder %v2614_v52, %v2484_v26 }
 0x20a   :  { %v2602_v27 = vpop.f32.mrb[28].mxu1  ;;  %v804_v13 = vpop.f32.mrb[44].mxu0  ;;  %vm968_vm12 = vcmp.eq.s32.totalorder %v2614_v52, %v2490_v29  ;;  %vm971_vm13 = vcmp.eq.s32.totalorder %v2632_v54, %v2476_v22  ;;  %vm972_vm14 = vcmp.eq.s32.totalorder %v2632_v54, %v2484_v26  ;;  %vm975_vm15 = vcmp.eq.s32.totalorder %v2632_v54, %v2482_v25 }
 0x20b   :  { %3434 = vst [vmem:[#allocation21_spill] sm:$0xff] %v2602_v27  ;;  %v1079_v33 = vsel %vm951_vm2, %v804_v13, 0.0  ;;  %v2609_v16 = vpop.f32.mrb[29].mxu1  ;;  %v806_v32 = vpop.f32.mrb[45].mxu0  ;;  %v1083_v13 = vsel %vm955_vm5, %v2434_v62, 0.0  ;;  %v873_v62 = vadd.s32 72, %v2458_v11  ;;  %vm976_vm0 = vcmp.eq.s32.totalorder %v2632_v54, %v2490_v29 }
 0x20c   :  { %3435 = vst [vmem:[#allocation22_spill] sm:$0xff] %v2609_v16  ;;  %v2616_v12 = vadd.f32 %v1079_v33, %v1075_v49  ;;  %v1080_v27 = vsel %vm952_vm4, %v806_v32, 0.0  ;;  %v2618_v34 = vpop.f32.mrb[30].mxu1  ;;  %v808_v58 = vpop.f32.mrb[46].mxu0  ;;  %v872_v32 = vadd.s32 64, %v2458_v11  ;;  %v1091_v56 = vsel %vm963_vm9, %v2442_v3, 0.0 }
 0x20d   :  { %3437 = vst [vmem:[#allocation24_spill] sm:$0xff] %v2618_v34  ;;  %v2624_v16 = vadd.f32 %v1080_v27, %v1076_v38  ;;  %v1087_v35 = vsel %vm959_vm6, %v808_v58, 0.0  ;;  %v2626_v23 = vpop.f32.mrb[31].mxu1  ;;  %v810_v19 = vpop.f32.mrb[47].mxu0 }
 0x20e   :  { %3438 = vst [vmem:[#allocation25_spill] sm:$0xff] %v2626_v23  ;;  %v2634_v49 = vadd.f32 %v1087_v35, %v1083_v13  ;;  %v1088_v33 = vsel %vm960_vm8, %v810_v19, 0.0  ;;  %v2658_v27 = vand.u32 63, %v872_v32 }
 0x20f   :  { %v2637_v34 = vadd.f32 %v1088_v33, %v1084_v60  ;;  %v1092_v60 = vsel %vm964_vm11, %v2446_v5, 0.0  ;;  %v2665_v33 = vand.u32 63, %v873_v62 }
 0x210   :  { %3440 = vst [vmem:[#allocation27_spill] sm:$0xff] %v2634_v49  ;;  %vm979_vm1 = vcmp.eq.s32.totalorder %v2658_v27, %v2476_v22  ;;  %vm980_vm2 = vcmp.eq.s32.totalorder %v2658_v27, %v2484_v26  ;;  %vm983_vm4 = vcmp.eq.s32.totalorder %v2658_v27, %v2482_v25  ;;  %vm984_vm6 = vcmp.eq.s32.totalorder %v2658_v27, %v2490_v29 }
 0x211   :  { %3441 = vst [vmem:[#allocation28_spill] sm:$0xff] %v2637_v34  ;;  %vm987_vm3 = vcmp.eq.s32.totalorder %v2665_v33, %v2476_v22  ;;  %vm988_vm5 = vcmp.eq.s32.totalorder %v2665_v33, %v2484_v26  ;;  %vm991_vm7 = vcmp.eq.s32.totalorder %v2665_v33, %v2482_v25  ;;  %vm992_vm8 = vcmp.eq.s32.totalorder %v2665_v33, %v2490_v29 }
 0x212   :  { %v2653_v19 = vpop.f32.mrb[32].mxu1  ;;  %v814_v35 = vpop.f32.mrb[48].mxu0 }
 0x213   :  { %v1095_v38 = vsel %vm967_vm10, %v814_v35, 0.0  ;;  %v2660_v58 = vpop.f32.mrb[33].mxu1  ;;  %v816_v13 = vpop.f32.mrb[49].mxu0  ;;  %v1099_v35 = vsel %vm971_vm13, %v2452_v8, 0.0 }
 0x214   :  { %v2667_v23 = vadd.f32 %v1095_v38, %v1091_v56  ;;  %v1096_v17 = vsel %vm968_vm12, %v816_v13, 0.0  ;;  %v2672_v3 = vpop.f32.mrb[34].mxu1  ;;  %v818_v32 = vpop.f32.mrb[50].mxu0  ;;  %v1100_v38 = vsel %vm972_vm14, %v2456_v10, 0.0  ;;  %v875_v13 = vadd.s32 88, %v2458_v11 }
 0x215   :  { %v2679_v7 = vadd.f32 %v1096_v17, %v1092_v60  ;;  %v1103_v5 = vsel %vm975_vm15, %v818_v32, 0.0  ;;  %v2684_v62 = vpop.f32.mrb[35].mxu1  ;;  %v820_v56 = vpop.f32.mrb[51].mxu0  ;;  %v2697_v17 = vshra.s32 %v2448_v6, 4  ;;  %v2699_v60 = vshra.s32 %v898_v0, 4 }
 0x216   :  { %3442 = vst [vmem:[#allocation29_spill] sm:$0xff] %v2667_v23  ;;  %v2691_v23 = vadd.f32 %v1103_v5, %v1099_v35  ;;  %v1104_v8 = vsel %vm976_vm0, %v820_v56, 0.0  ;;  %v2713_v10 = vand.u32 63, %v874_v9  ;;  %v876_v0 = vadd.s32 96, %v2458_v11 }
 0x217   :  { %3443 = vst [vmem:[#allocation30_spill] sm:$0xff] %v2679_v7  ;;  %v2701_v32 = vadd.f32 %v1104_v8, %v1100_v38  ;;  %v2718_v35 = vand.u32 63, %v875_v13  ;;  %v877_v5 = vadd.s32 104, %v2458_v11  ;;  %v878_v56 = vadd.s32 112, %v2458_v11 }
 0x218   :  { %3444 = vst [vmem:[#allocation31_spill] sm:$0xff] %v2691_v23  ;;  %3446 = vst [vmem:[#allocation33_spill] sm:$0xff] %v2713_v10  ;;  %v1107_v9 = vsel %vm979_vm1, %v2467_v18, 0.0  ;;  %v1108_v13 = vsel %vm980_vm2, %v2471_v20, 0.0  ;;  %v2745_v49 = vand.u32 63, %v876_v0  ;;  %vm913_vm9 = vcmp.eq.s32.totalorder %v2474_v21, %v2697_v17 }
 0x219   :  { %3445 = vst [vmem:[#allocation32_spill] sm:$0xff] %v2701_v32  ;;  %3447 = vst [vmem:[#allocation34_spill] sm:$0xff] %v2718_v35  ;;  %v879_v32 = vadd.s32 120, %v2458_v11  ;;  %v901_v11 = vadd.s32 512, %v2448_v6  ;;  %vm914_vm10 = vcmp.eq.s32.totalorder %v2474_v21, %v2699_v60  ;;  %vm921_vm11 = vcmp.eq.s32.totalorder %v2492_v30, %v2697_v17 }
 0x21a   :  { %v2722_v38 = vpop.f32.mrb[36].mxu1  ;;  %v824_v8 = vpop.f32.mrb[52].mxu0  ;;  %vm922_vm12 = vcmp.eq.s32.totalorder %v2492_v30, %v2699_v60  ;;  %vm995_vm13 = vcmp.eq.s32.totalorder %v2713_v10, %v2476_v22  ;;  %vm996_vm14 = vcmp.eq.s32.totalorder %v2713_v10, %v2484_v26  ;;  %vm999_vm15 = vcmp.eq.s32.totalorder %v2713_v10, %v2482_v25 }
 0x21b   :  { %v1111_v23 = vsel %vm983_vm4, %v824_v8, 0.0  ;;  %v2728_v7 = vpop.f32.mrb[37].mxu1  ;;  %v826_v4 = vpop.f32.mrb[53].mxu0  ;;  %v1115_v8 = vsel %vm987_vm3, %v2480_v24, 0.0  ;;  %v1116_v24 = vsel %vm988_vm5, %v2488_v28, 0.0  ;;  %vm1003_vm0 = vcmp.eq.s32.totalorder %v2718_v35, %v2476_v22 }
 0x21c   :  { %v2736_v2 = vadd.f32 %v1111_v23, %v1107_v9  ;;  %v1112_v54 = vsel %vm984_vm6, %v826_v4, 0.0  ;;  %v2738_v34 = vpop.f32.mrb[38].mxu1  ;;  %v828_v18 = vpop.f32.mrb[54].mxu0  ;;  %v902_v9 = vadd.s32 640, %v2448_v6  ;;  %v2786_v6 = vshra.s32 %v901_v11, 4 }
 0x21d   :  { %v2747_v52 = vadd.f32 %v1112_v54, %v1108_v13  ;;  %v1119_v20 = vsel %vm991_vm7, %v828_v18, 0.0  ;;  %v2752_v23 = vpop.f32.mrb[39].mxu1  ;;  %v830_v4 = vpop.f32.mrb[55].mxu0  ;;  %v2772_v13 = vand.u32 63, %v877_v5  ;;  %v2774_v18 = vand.u32 63, %v878_v56 }
 0x21e   :  { %v2762_v54 = vadd.f32 %v1119_v20, %v1115_v8  ;;  %v1120_v0 = vsel %vm992_vm8, %v830_v4, 0.0  ;;  %vm1004_vm1 = vcmp.eq.s32.totalorder %v2718_v35, %v2484_v26  ;;  %vm1011_vm2 = vcmp.eq.s32.totalorder %v2745_v49, %v2476_v22 }
 0x21f   :  { %3448 = vst [vmem:[#allocation35_spill] sm:$0xff] %v2747_v52  ;;  %v2776_v52 = vand.u32 63, %v879_v32  ;;  %v2778_v28 = vadd.f32 %v1120_v0, %v1116_v24  ;;  %vm1000_vm3 = vcmp.eq.s32.totalorder %v2713_v10, %v2490_v29  ;;  %vm1012_vm4 = vcmp.eq.s32.totalorder %v2745_v49, %v2484_v26 }
 0x220   :  { %3449 = vst [vmem:[#allocation36_spill] sm:$0xff] %v2762_v54  ;;  %vm1019_vm5 = vcmp.eq.s32.totalorder %v2772_v13, %v2476_v22  ;;  %vm1007_vm6 = vcmp.eq.s32.totalorder %v2718_v35, %v2482_v25  ;;  %v2804_v56 = vshra.s32 %v902_v9, 4  ;;  %v1123_v11 = vsel %vm995_vm13, %v2653_v19, 0.0 }
 0x221   :  { %3450 = vst [vmem:[#allocation37_spill] sm:$0xff] %v2778_v28  ;;  %vm1020_vm7 = vcmp.eq.s32.totalorder %v2772_v13, %v2484_v26  ;;  %vm1008_vm8 = vcmp.eq.s32.totalorder %v2718_v35, %v2490_v29  ;;  %v1124_v24 = vsel %vm996_vm14, %v2660_v58, 0.0  ;;  %vm917_vm13 = vcmp.eq.s32.totalorder %v2474_v21, %v2786_v6 }
 0x222   :  { %v2800_v32 = vpop.f32.mrb[40].mxu1  ;;  %v834_v5 = vpop.f32.mrb[56].mxu0  ;;  %vm933_vm14 = vcmp.eq.s32.totalorder %v2518_v41, %v2786_v6 }
 0x223   :  { %v1127_v8 = vsel %vm999_vm15, %v834_v5, 0.0  ;;  %v2809_v20 = vpop.f32.mrb[41].mxu1  ;;  %v836_v4 = vpop.f32.mrb[57].mxu0  ;;  %v1131_v5 = vsel %vm1003_vm0, %v2672_v3, 0.0  ;;  %v1132_v3 = vsel %vm1004_vm1, %v2684_v62, 0.0  ;;  %vm925_vm0 = vcmp.eq.s32.totalorder %v2492_v30, %v2786_v6 }
 0x224   :  { %v2817_v0 = vadd.f32 %v1127_v8, %v1123_v11  ;;  %v1128_v9 = vsel %vm1000_vm3, %v836_v4, 0.0  ;;  %v2819_v28 = vpop.f32.mrb[42].mxu1  ;;  %v838_v19 = vpop.f32.mrb[58].mxu0  ;;  %vm926_vm3 = vcmp.eq.s32.totalorder %v2492_v30, %v2804_v56  ;;  %vm1032_vm15 = vcmp.eq.s32.totalorder %v2774_v18, %v2490_v29 }
 0x225   :  { %v2829_v54 = vadd.f32 %v1128_v9, %v1124_v24  ;;  %v1135_v58 = vsel %vm1007_vm6, %v838_v19, 0.0  ;;  %v2834_v11 = vpop.f32.mrb[43].mxu1  ;;  %v840_v8 = vpop.f32.mrb[59].mxu0  ;;  %vm1023_vm6 = vcmp.eq.s32.totalorder %v2772_v13, %v2482_v25  ;;  %v1041_v9 = vsel %vm913_vm9, %v2392_v42, 0.0 }
 0x226   :  { %3451 = vst [vmem:[#allocation38_spill] sm:$0xff] %v2817_v0  ;;  %v2846_v4 = vadd.f32 %v1135_v58, %v1131_v5  ;;  %v1136_v24 = vsel %vm1008_vm8, %v840_v8, 0.0  ;;  %vm1031_vm8 = vcmp.eq.s32.totalorder %v2774_v18, %v2482_v25  ;;  %v1042_v19 = vsel %vm914_vm10, %v2396_v44, 0.0 }
 0x227   :  { %3452 = vst [vmem:[#allocation39_spill] sm:$0xff] %v2829_v54  ;;  %v2861_v62 = vadd.f32 %v1136_v24, %v1132_v3  ;;  %vm934_vm1 = vcmp.eq.s32.totalorder %v2518_v41, %v2804_v56  ;;  %v1049_v5 = vsel %vm921_vm11, %v2400_v46, 0.0  ;;  %v1050_v42 = vsel %vm922_vm12, %v2404_v48, 0.0 }
 0x228   :  { %3453 = vst [vmem:[#allocation40_spill] sm:$0xff] %v2846_v4  ;;  %v1139_v44 = vsel %vm1011_vm2, %v2722_v38, 0.0  ;;  %v1140_v58 = vsel %vm1012_vm4, %v2728_v7, 0.0  ;;  %vm941_vm9 = vcmp.eq.s32.totalorder %v2536_v31, %v2786_v6  ;;  %vm1039_vm10 = vcmp.eq.s32.totalorder %v2776_v52, %v2482_v25 }
 0x229   :  { %3454 = vst [vmem:[#allocation41_spill] sm:$0xff] %v2861_v62  ;;  %v1147_v46 = vsel %vm1019_vm5, %v2738_v34, 0.0  ;;  %v1148_v48 = vsel %vm1020_vm7, %v2752_v23, 0.0  ;;  %vm3455_vm11 = vcmp.eq.s32.totalorder %v2745_v49, %v2482_v25  ;;  %vm3456_vm12 = vcmp.eq.s32.totalorder %v2474_v21, %v2804_v56 }
 0x22a   :  { %v671_v8 = vpop.f32.mrb[44].mxu1  ;;  %v844_v3 = vpop.f32.mrb[60].mxu0  ;;  %vm3457_vm2 = vcmp.eq.s32.totalorder %v2745_v49, %v2490_v29  ;;  %vm3458_vm4 = vcmp.eq.s32.totalorder %v2772_v13, %v2490_v29  ;;  %vm3459_vm5 = vcmp.eq.s32.totalorder %v2518_v41, %v2697_v17  ;;  %vm942_vm7 = vcmp.eq.s32.totalorder %v2536_v31, %v2804_v56 }
 0x22b   :  { %v1045_v7 = vsel %vm917_vm13, %v671_v8, 0.0  ;;  %v1143_v38 = vsel %vm3455_vm11, %v844_v3, 0.0  ;;  %v673_v24 = vpop.f32.mrb[45].mxu1  ;;  %v846_v62 = vpop.f32.mrb[61].mxu0  ;;  %vm1040_vm13 = vcmp.eq.s32.totalorder %v2776_v52, %v2490_v29  ;;  %vm3463_vm11 = vcmp.eq.s32.totalorder %v2774_v18, %v2476_v22 }
 0x22c   :  { %v1169_v4 = vadd.f32 %v1045_v7, %v1041_v9  ;;  %v2925_v54 = vadd.f32 %v1143_v38, %v1139_v44  ;;  %v1046_v34 = vsel %vm3456_vm12, %v673_v24, 0.0  ;;  %v1144_v23 = vsel %vm3457_vm2, %v846_v62, 0.0  ;;  %v675_v0 = vpop.f32.mrb[46].mxu1  ;;  %v848_v35 = vpop.f32.mrb[62].mxu0 }
 0x22d   :  { %v1170_v8 = vadd.f32 %v1046_v34, %v1042_v19  ;;  %v2933_v10 = vadd.f32 %v1144_v23, %v1140_v58  ;;  %v1053_v3 = vsel %vm925_vm0, %v675_v0, 0.0  ;;  %v1151_v9 = vsel %vm1023_vm6, %v848_v35, 0.0  ;;  %v677_v44 = vpop.f32.mrb[47].mxu1  ;;  %v850_v21 = vpop.f32.mrb[63].mxu0 }
 0x22e   :  { %v1173_v7 = vadd.f32 %v1053_v3, %v1049_v5  ;;  %v2941_v38 = vadd.f32 %v1151_v9, %v1147_v46  ;;  %v1054_v62 = vsel %vm926_vm3, %v677_v44, 0.0  ;;  %v1152_v19 = vsel %vm3458_vm4, %v850_v21, 0.0 }
 0x22f   :  { %v1174_v58 = vadd.f32 %v1054_v62, %v1050_v42  ;;  %v2949_v24 = vadd.f32 %v1152_v19, %v1148_v48  ;;  %v1233_v0 = vadd.f32 %v2520_v1, %v1169_v4  ;;  %v1234_v35 = vadd.f32 %v2528_v15, %v1170_v8 }
 0x230   :  { %v1057_v5 = vsel %vm3459_vm5, %v2408_v50, 0.0  ;;  %v1235_v46 = vadd.f32 %v2538_v36, %v1173_v7  ;;  %vm3460_vm3 = vcmp.eq.s32.totalorder %v2518_v41, %v2699_v60  ;;  %vm3461_vm0 = vcmp.eq.s32.totalorder %v2536_v31, %v2697_v17 }
 0x231   :  { %v1058_v30 = vsel %vm3460_vm3, %v2412_v51, 0.0  ;;  %v1065_v1 = vsel %vm3461_vm0, %v2416_v53, 0.0  ;;  %v1236_v50 = vadd.f32 %v2540_v39, %v1174_v58  ;;  %v2971_v15 = vadd.f32 %v1234_v35, %v1233_v0 }
 0x232   :  { %vm3462_vm6 = vcmp.eq.s32.totalorder %v2536_v31, %v2699_v60  ;;  %v1155_v4 = vsel %vm3463_vm11, %v2800_v32, 0.0  ;;  %vm3464_vm12 = vcmp.eq.s32.totalorder %v2774_v18, %v2484_v26  ;;  %vm3465_vm2 = vcmp.eq.s32.totalorder %v2776_v52, %v2476_v22  ;;  %v681_v39 = vpop.f32.mrb[48].mxu1  ;;  %v854_v42 = vpop.f32.mrb[64].mxu0 }
 0x233   :  { %v1066_v36 = vsel %vm3462_vm6, %v2420_v55, 0.0  ;;  %v1156_v51 = vsel %vm3464_vm12, %v2809_v20, 0.0  ;;  %v1163_v53 = vsel %vm3465_vm2, %v2819_v28, 0.0  ;;  %vm3466_vm4 = vcmp.eq.s32.totalorder %v2776_v52, %v2484_v26  ;;  %v856_v48 = vpop.f32.mrb[65].mxu0  ;;  %1297 = vrot.lane.b32.xlu0 %v2971_v15, %s2143_s2  ;;  %v683_v22 = vpop.f32.mrb[49].mxu1 }
 0x234   :  { %v1164_v55 = vsel %vm3466_vm4, %v2834_v11, 0.0  ;;  %v1061_v32 = vsel %vm933_vm14, %v681_v39, 0.0  ;;  %v1159_v20 = vsel %vm1031_vm8, %v854_v42, 0.0  ;;  %v3001_v28 = vadd.f32 %v1236_v50, %v1235_v46  ;;  %v685_v8 = vpop.f32.mrb[50].mxu1  ;;  %v858_v3 = vpop.f32.mrb[66].mxu0 }
 0x235   :  { %v1177_v34 = vadd.f32 %v1061_v32, %v1057_v5  ;;  %v3003_v23 = vadd.f32 %v1159_v20, %v1155_v4  ;;  %v1160_v26 = vsel %vm1032_vm15, %v856_v48, 0.0  ;;  %v1062_v11 = vsel %vm934_vm1, %v683_v22, 0.0  ;;  %v687_v62 = vpop.f32.mrb[51].mxu1  ;;  %v860_v19 = vpop.f32.mrb[67].mxu0 }
 0x236   :  { %v3011_v9 = vadd.f32 %v1160_v26, %v1156_v51  ;;  %v1178_v44 = vadd.f32 %v1062_v11, %v1058_v30  ;;  %v1069_v21 = vsel %vm941_vm9, %v685_v8, 0.0  ;;  %v1167_v7 = vsel %vm1039_vm10, %v858_v3, 0.0  ;;  %v3471_v8 = vld [vmem:[#allocation5_spill] sm:$0xff] }
 0x237   :  { %v1181_v58 = vadd.f32 %v1069_v21, %v1065_v1  ;;  %v3019_v0 = vadd.f32 %v1167_v7, %v1163_v53  ;;  %v1070_v41 = vsel %vm942_vm7, %v687_v62, 0.0  ;;  %v1168_v35 = vsel %vm1040_vm13, %v860_v19, 0.0  ;;  %1299 = vrot.lane.b32.xlu0 %v3001_v28, %s2143_s2  ;;  %v3472_v62 = vld [vmem:[#allocation6_spill] sm:$0xff] }
 0x238   :  { %v1182_v5 = vadd.f32 %v1070_v41, %v1066_v36  ;;  %v3027_v46 = vadd.f32 %v1168_v35, %v1164_v55  ;;  %v1237_v25 = vadd.f32 %v2568_v37, %v1177_v34  ;;  %v1238_v30 = vadd.f32 %v2576_v43, %v1178_v44  ;;  %v3468_v34 = vld [vmem:[#allocation27_spill] sm:$0xff] }
 0x239   :  { %vm945_vm15 = vcmp.eq.s32.totalorder %v2566_v45, %v2697_v17  ;;  %v1239_v31 = vadd.f32 %v2586_v40, %v1181_v58  ;;  %vm949_vm14 = vcmp.eq.s32.totalorder %v2566_v45, %v2786_v6  ;;  %vm946_vm1 = vcmp.eq.s32.totalorder %v2566_v45, %v2699_v60 }
 0x23a   :  { %v1240_v29 = vadd.f32 %v2588_v14, %v1182_v5  ;;  %v3041_v1 = vadd.f32 %v1238_v30, %v1237_v25  ;;  %vm950_vm8 = vcmp.eq.s32.totalorder %v2566_v45, %v2804_v56  ;;  %vm953_vm9 = vcmp.eq.s32.totalorder %v2584_v47, %v2697_v17  ;;  %v691_v43 = vpop.f32.mrb[52].mxu1  ;;  %v3473_v5 = vld [vmem:[#allocation7_spill] sm:$0xff] }
 0x23b   :  { %vm954_vm10 = vcmp.eq.s32.totalorder %v2584_v47, %v2699_v60  ;;  %vm957_vm5 = vcmp.eq.s32.totalorder %v2584_v47, %v2786_v6  ;;  %v1073_v37 = vsel %vm945_vm15, %v2424_v57, 0.0  ;;  %v1077_v40 = vsel %vm949_vm14, %v691_v43, 0.0  ;;  %v693_v14 = vpop.f32.mrb[53].mxu1  ;;  %v3474_v43 = vld [vmem:[#allocation8_spill] sm:$0xff] }
 0x23c   :  { %1301 = vrot.lane.b32.xlu1 %v3041_v1, %s2143_s2  ;;  %vm958_vm7 = vcmp.eq.s32.totalorder %v2584_v47, %v2804_v56  ;;  %v3056_v45 = vadd.f32 %v1240_v29, %v1239_v31  ;;  %v1074_v50 = vsel %vm946_vm1, %v2428_v59, 0.0  ;;  %v1185_v36 = vadd.f32 %v1077_v40, %v1073_v37  ;;  %v695_v51 = vpop.f32.mrb[54].mxu1  ;;  %v3475_v40 = vld [vmem:[#allocation29_spill] sm:$0xff] }
 0x23d   :  { %v1078_v4 = vsel %vm950_vm8, %v693_v14, 0.0  ;;  %v1081_v53 = vsel %vm953_vm9, %v2432_v61, 0.0  ;;  %v1085_v42 = vsel %vm957_vm5, %v695_v51, 0.0  ;;  %v697_v57 = vpop.f32.mrb[55].mxu1  ;;  %v1082_v55 = vsel %vm954_vm10, %v2436_v63, 0.0  ;;  %v3467_v61 = vld [vmem:[#allocation23_spill] sm:$0xff] }
 0x23e   :  { %v1186_v39 = vadd.f32 %v1078_v4, %v1074_v50  ;;  %v1241_v32 = vadd.f32 %v2616_v12, %v1185_v36  ;;  %v1189_v20 = vadd.f32 %v1085_v42, %v1081_v53  ;;  %v1086_v48 = vsel %vm958_vm7, %v697_v57, 0.0  ;;  %v3469_v63 = vld [vmem:[#allocation28_spill] sm:$0xff]  ;;  %v3476_v4 = vld [vmem:[#allocation30_spill] sm:$0xff] }
 0x23f   :  { %v1190_v59 = vadd.f32 %v1086_v48, %v1082_v55  ;;  %vm961_vm13 = vcmp.eq.s32.totalorder %v3467_v61, %v2697_v17  ;;  %vm965_vm3 = vcmp.eq.s32.totalorder %v3467_v61, %v2786_v6  ;;  %vm962_vm0 = vcmp.eq.s32.totalorder %v3467_v61, %v2699_v60  ;;  %v3478_v57 = vld [vmem:[#allocation32_spill] sm:$0xff]  ;;  %v3479_v48 = vld [vmem:[#allocation9_spill] sm:$0xff] }
 0x240   :  { %v1242_v22 = vadd.f32 %v2624_v16, %v1186_v39  ;;  %1303 = vrot.lane.b32.xlu1 %v3056_v45, %s2143_s2  ;;  %v1243_v26 = vadd.f32 %v3468_v34, %v1189_v20  ;;  %vm966_vm6 = vcmp.eq.s32.totalorder %v3467_v61, %v2804_v56  ;;  %v3470_v16 = vld [vmem:[#allocation26_spill] sm:$0xff]  ;;  %v1089_v3 = vsel %vm961_vm13, %v3471_v8, 0.0  ;;  %v3477_v39 = vld [vmem:[#allocation31_spill] sm:$0xff] }
 0x241   :  { %v1244_v47 = vadd.f32 %v3469_v63, %v1190_v59  ;;  %vm969_vm11 = vcmp.eq.s32.totalorder %v3470_v16, %v2697_v17  ;;  %vm970_vm12 = vcmp.eq.s32.totalorder %v3470_v16, %v2699_v60  ;;  %vm973_vm2 = vcmp.eq.s32.totalorder %v3470_v16, %v2786_v6  ;;  %v3480_v34 = vld [vmem:[#allocation10_spill] sm:$0xff] }
 0x242   :  { %v3076_v12 = vadd.f32 %v1242_v22, %v1241_v32  ;;  %v701_v11 = vpop.f32.mrb[56].mxu1  ;;  %vm974_vm4 = vcmp.eq.s32.totalorder %v3470_v16, %v2804_v56  ;;  %v1090_v19 = vsel %vm962_vm0, %v3472_v62, 0.0  ;;  %v1097_v25 = vsel %vm969_vm11, %v3473_v5, 0.0  ;;  %v3482_v62 = vld [vmem:[#allocation12_spill] sm:$0xff]  ;;  %v3483_v5 = vld [vmem:[#allocation35_spill] sm:$0xff] }
 0x243   :  { %v1093_v44 = vsel %vm965_vm3, %v701_v11, 0.0  ;;  %v703_v21 = vpop.f32.mrb[57].mxu1  ;;  %v3091_v7 = vadd.f32 %v1244_v47, %v1243_v26  ;;  %v1098_v37 = vsel %vm970_vm12, %v3474_v43, 0.0  ;;  %vm977_vm15 = vcmp.eq.s32.totalorder %v2658_v27, %v2697_v17  ;;  %v3481_v11 = vld [vmem:[#allocation11_spill] sm:$0xff] }
 0x244   :  { %1305 = vrot.lane.b32.xlu1 %v3076_v12, %s2143_s2  ;;  %v1193_v58 = vadd.f32 %v1093_v44, %v1089_v3  ;;  %v1094_v41 = vsel %vm966_vm6, %v703_v21, 0.0  ;;  %v705_v35 = vpop.f32.mrb[58].mxu1  ;;  %vm981_vm14 = vcmp.eq.s32.totalorder %v2658_v27, %v2786_v6  ;;  %vm978_vm1 = vcmp.eq.s32.totalorder %v2658_v27, %v2699_v60 }
 0x245   :  { %v1194_v30 = vadd.f32 %v1094_v41, %v1090_v19  ;;  %v1101_v31 = vsel %vm973_vm2, %v705_v35, 0.0  ;;  %v707_v29 = vpop.f32.mrb[59].mxu1  ;;  %vm982_vm8 = vcmp.eq.s32.totalorder %v2658_v27, %v2804_v56  ;;  %vm985_vm9 = vcmp.eq.s32.totalorder %v2665_v33, %v2697_v17 }
 0x246   :  { %v1245_v14 = vadd.f32 %v3475_v40, %v1193_v58  ;;  %v1197_v50 = vadd.f32 %v1101_v31, %v1097_v25  ;;  %v1102_v36 = vsel %vm974_vm4, %v707_v29, 0.0  ;;  %vm986_vm10 = vcmp.eq.s32.totalorder %v2665_v33, %v2699_v60  ;;  %v3484_v31 = vld [vmem:[#allocation33_spill] sm:$0xff]  ;;  %v3485_v29 = vld [vmem:[#allocation36_spill] sm:$0xff] }
 0x247   :  { %v1246_v51 = vadd.f32 %v3476_v4, %v1194_v30  ;;  %v1198_v53 = vadd.f32 %v1102_v36, %v1098_v37  ;;  %vm989_vm5 = vcmp.eq.s32.totalorder %v2665_v33, %v2786_v6  ;;  %v1105_v22 = vsel %vm977_vm15, %v3479_v48, 0.0  ;;  %v3490_v48 = vld [vmem:[#allocation15_spill] sm:$0xff] }
 0x248   :  { %1307 = vrot.lane.b32.xlu1 %v3091_v7, %s2143_s2  ;;  %v1247_v42 = vadd.f32 %v3477_v39, %v1197_v50  ;;  %vm990_vm7 = vcmp.eq.s32.totalorder %v2665_v33, %v2804_v56  ;;  %v1106_v26 = vsel %vm978_vm1, %v3480_v34, 0.0  ;;  %v1113_v8 = vsel %vm985_vm9, %v3481_v11, 0.0  ;;  %v3486_v33 = vld [vmem:[#allocation37_spill] sm:$0xff]  ;;  %v3489_v39 = vld [vmem:[#allocation14_spill] sm:$0xff] }
 0x249   :  { %v1248_v55 = vadd.f32 %v3478_v57, %v1198_v53  ;;  %v3113_v32 = vadd.f32 %v1246_v51, %v1245_v14  ;;  %v1114_v19 = vsel %vm986_vm10, %v3482_v62, 0.0  ;;  %vm993_vm13 = vcmp.eq.s32.totalorder %v3484_v31, %v2697_v17  ;;  %v3488_v50 = vld [vmem:[#allocation13_spill] sm:$0xff]  ;;  %v3494_v62 = vld [vmem:[#allocation40_spill] sm:$0xff] }
 0x24a   :  { %v711_v20 = vpop.f32.mrb[60].mxu1  ;;  %vm997_vm3 = vcmp.eq.s32.totalorder %v3484_v31, %v2786_v6  ;;  %vm994_vm0 = vcmp.eq.s32.totalorder %v3484_v31, %v2699_v60  ;;  %vm998_vm6 = vcmp.eq.s32.totalorder %v3484_v31, %v2804_v56  ;;  %v1121_v36 = vsel %vm993_vm13, %v3488_v50, 0.0  ;;  %v3498_v50 = vld [vmem:[#allocation19_spill] sm:$0xff] }
 0x24b   :  { %v1109_v59 = vsel %vm981_vm14, %v711_v20, 0.0  ;;  %v713_v61 = vpop.f32.mrb[61].mxu1  ;;  %v3124_v27 = vadd.f32 %v1248_v55, %v1247_v42  ;;  %v1122_v42 = vsel %vm994_vm0, %v3489_v39, 0.0  ;;  %vm1009_vm15 = vcmp.eq.s32.totalorder %v2745_v49, %v2697_v17 }
 0x24c   :  { %v1201_v63 = vadd.f32 %v1109_v59, %v1105_v22  ;;  %v1110_v47 = vsel %vm982_vm8, %v713_v61, 0.0  ;;  %v715_v16 = vpop.f32.mrb[62].mxu1  ;;  %vm1013_vm14 = vcmp.eq.s32.totalorder %v2745_v49, %v2786_v6  ;;  %vm1010_vm1 = vcmp.eq.s32.totalorder %v2745_v49, %v2699_v60 }
 0x24d   :  { %v1202_v3 = vadd.f32 %v1110_v47, %v1106_v26  ;;  %v1117_v44 = vsel %vm989_vm5, %v715_v16, 0.0  ;;  %v717_v21 = vpop.f32.mrb[63].mxu1  ;;  %v3491_v26 = vld [vmem:[#allocation16_spill] sm:$0xff]  ;;  %v3492_v47 = vld [vmem:[#allocation38_spill] sm:$0xff]  ;;  %vm1014_vm8 = vcmp.eq.s32.totalorder %v2745_v49, %v2804_v56  ;;  %vm1017_vm9 = vcmp.eq.s32.totalorder %v2772_v13, %v2697_v17 }
 0x24e   :  { %v1249_v58 = vadd.f32 %v2736_v2, %v1201_v63  ;;  %v1205_v41 = vadd.f32 %v1117_v44, %v1113_v8  ;;  %v1118_v35 = vsel %vm990_vm7, %v717_v21, 0.0  ;;  %v3487_v2 = vld [vmem:[#allocation34_spill] sm:$0xff]  ;;  %vm1018_vm10 = vcmp.eq.s32.totalorder %v2772_v13, %v2699_v60 }
 0x24f   :  { %v1250_v25 = vadd.f32 %v3483_v5, %v1202_v3  ;;  %v1206_v30 = vadd.f32 %v1118_v35, %v1114_v19  ;;  %vm1001_vm11 = vcmp.eq.s32.totalorder %v3487_v2, %v2697_v17  ;;  %vm1002_vm12 = vcmp.eq.s32.totalorder %v3487_v2, %v2699_v60  ;;  %v3493_v3 = vld [vmem:[#allocation39_spill] sm:$0xff] }
 0x250   :  { %v1251_v43 = vadd.f32 %v3485_v29, %v1205_v41  ;;  %vm1005_vm2 = vcmp.eq.s32.totalorder %v3487_v2, %v2786_v6  ;;  %vm1006_vm4 = vcmp.eq.s32.totalorder %v3487_v2, %v2804_v56  ;;  %v1129_v22 = vsel %vm1001_vm11, %v3490_v48, 0.0 }
 0x251   :  { %v1252_v37 = vadd.f32 %v3486_v33, %v1206_v30  ;;  %v3142_v40 = vadd.f32 %v1250_v25, %v1249_v58  ;;  %v1130_v63 = vsel %vm1002_vm12, %v3491_v26, 0.0  ;;  %v3495_v58 = vld [vmem:[#allocation41_spill] sm:$0xff]  ;;  %vm1021_vm5 = vcmp.eq.s32.totalorder %v2772_v13, %v2786_v6 }
 0x252   :  { %v721_v14 = vpop.f32.mrb[64].mxu1  ;;  %v3496_v25 = vld [vmem:[#allocation17_spill] sm:$0xff]  ;;  %vm1022_vm7 = vcmp.eq.s32.totalorder %v2772_v13, %v2804_v56  ;;  %vm1025_vm13 = vcmp.eq.s32.totalorder %v2774_v18, %v2697_v17  ;;  %vm1026_vm0 = vcmp.eq.s32.totalorder %v2774_v18, %v2699_v60  ;;  %vm1033_vm11 = vcmp.eq.s32.totalorder %v2776_v52, %v2697_v17  ;;  %v3501_v17 = vld [vmem:[#allocation22_spill] sm:$0xff] }
 0x253   :  { %v1125_v4 = vsel %vm997_vm3, %v721_v14, 0.0  ;;  %1313 = vrot.lane.b32.xlu1 %v3142_v40, %s2143_s2  ;;  %v723_v51 = vpop.f32.mrb[65].mxu1  ;;  %v3155_v53 = vadd.f32 %v1252_v37, %v1251_v43  ;;  %v1137_v30 = vsel %vm1009_vm15, %v3496_v25, 0.0  ;;  %v3497_v43 = vld [vmem:[#allocation18_spill] sm:$0xff]  ;;  %vm1029_vm3 = vcmp.eq.s32.totalorder %v2774_v18, %v2786_v6 }
 0x254   :  { %v1209_v57 = vadd.f32 %v1125_v4, %v1121_v36  ;;  %v1126_v55 = vsel %vm998_vm6, %v723_v51, 0.0  ;;  %v725_v20 = vpop.f32.mrb[66].mxu1  ;;  %v1138_v33 = vsel %vm1010_vm1, %v3497_v43, 0.0  ;;  %v1145_v36 = vsel %vm1017_vm9, %v3498_v50, 0.0 }
 0x255   :  { %v1210_v59 = vadd.f32 %v1126_v55, %v1122_v42  ;;  %v1133_v61 = vsel %vm1005_vm2, %v725_v20, 0.0  ;;  %1315 = vrot.lane.b32.xlu0 %v3155_v53, %s2143_s2  ;;  %v727_v34 = vpop.f32.mrb[67].mxu1  ;;  %v3499_v42 = vld [vmem:[#allocation20_spill] sm:$0xff]  ;;  %vm1030_vm6 = vcmp.eq.s32.totalorder %v2774_v18, %v2804_v56  ;;  %vm1034_vm12 = vcmp.eq.s32.totalorder %v2776_v52, %v2699_v60 }
 0x256   :  { %v1253_v16 = vadd.f32 %v3492_v47, %v1209_v57  ;;  %v1213_v11 = vadd.f32 %v1133_v61, %v1129_v22  ;;  %v1134_v8 = vsel %vm1006_vm4, %v727_v34, 0.0  ;;  %v1146_v57 = vsel %vm1018_vm10, %v3499_v42, 0.0 }
 0x257   :  { %v1254_v44 = vadd.f32 %v3493_v3, %v1210_v59  ;;  %v1214_v21 = vadd.f32 %v1134_v8, %v1130_v63  ;;  %1309 = vrot.lane.b32.xlu1 %v3113_v32, %s2143_s2  ;;  %vm1037_vm2 = vcmp.eq.s32.totalorder %v2776_v52, %v2786_v6  ;;  %vm1038_vm4 = vcmp.eq.s32.totalorder %v2776_v52, %v2804_v56  ;;  %v3502_v8 = vld [vmem:[#allocation24_spill] sm:$0xff] }
 0x258   :  { %v1255_v19 = vadd.f32 %v3494_v62, %v1213_v11  ;;  %v1154_v63 = vsel %vm1026_vm0, %v3501_v17, 0.0  ;;  %v1161_v3 = vsel %vm1033_vm11, %v3502_v8, 0.0  ;;  %v3503_v62 = vld [vmem:[#allocation25_spill] sm:$0xff]  ;;  %vm1524_vm15 = vcmask 130048  }
 0x259   :  { %v1256_v41 = vadd.f32 %v3495_v58, %v1214_v21  ;;  %v3179_v35 = vadd.f32 %v1254_v44, %v1253_v16 }
 0x25a   :  { %v731_v5 = vpop.f32.mrb[68].mxu1 }
 0x25b   :  { %v1141_v31 = vsel %vm1013_vm14, %v731_v5, 0.0  ;;  %1311 = vrot.lane.b32.xlu1 %v3124_v27, %s2143_s2  ;;  %1317 = vrot.lane.b32.xlu0 %v3179_v35, %s2143_s2  ;;  %v733_v49 = vpop.f32.mrb[69].mxu1  ;;  %v3196_v29 = vadd.f32 %v1256_v41, %v1255_v19  ;;  %v1162_v19 = vsel %vm1034_vm12, %v3503_v62, 0.0  ;;  %vm1612_vm14 = vcmask 24576  }
 0x25c   :  { %v1217_v37 = vadd.f32 %v1141_v31, %v1137_v30  ;;  %v1142_v2 = vsel %vm1014_vm8, %v733_v49, 0.0  ;;  %v735_v14 = vpop.f32.mrb[70].mxu1 }
 0x25d   :  { %v1218_v4 = vadd.f32 %v1142_v2, %v1138_v33  ;;  %v1149_v51 = vsel %vm1021_vm5, %v735_v14, 0.0  ;;  %v737_v39 = vpop.f32.mrb[71].mxu1 }
 0x25e   :  { %v1257_v55 = vadd.f32 %v2925_v54, %v1217_v37  ;;  %v1221_v20 = vadd.f32 %v1149_v51, %v1145_v36  ;;  %v1150_v48 = vsel %vm1022_vm7, %v737_v39, 0.0 }
 0x25f   :  { %v1258_v22 = vadd.f32 %v2933_v10, %v1218_v4  ;;  %v1222_v59 = vadd.f32 %v1150_v48, %v1146_v57  ;;  %1319 = vrot.lane.b32.xlu0 %v3196_v29, %s2143_s2 }
 0x260   :  { %v1259_v61 = vadd.f32 %v2941_v38, %v1221_v20  ;;  %v3500_v38 = vld [vmem:[#allocation21_spill] sm:$0xff] }
 0x261   :  { %v1260_v54 = vadd.f32 %v2949_v24, %v1222_v59  ;;  %v3216_v13 = vadd.f32 %v1258_v22, %v1257_v55  ;;  %v1153_v34 = vsel %vm1025_vm13, %v3500_v38, 0.0 }
 0x262   :  { %v741_v10 = vpop.f32.mrb[72].mxu1 }
 0x263   :  { %v1157_v26 = vsel %vm1029_vm3, %v741_v10, 0.0  ;;  %1321 = vrot.lane.b32.xlu0 %v3216_v13, %s2143_s2  ;;  %v743_v24 = vpop.f32.mrb[73].mxu1  ;;  %v3231_v18 = vadd.f32 %v1260_v54, %v1259_v61 }
 0x264   :  { %v1225_v47 = vadd.f32 %v1157_v26, %v1153_v34  ;;  %v1158_v16 = vsel %vm1030_vm6, %v743_v24, 0.0  ;;  %v745_v11 = vpop.f32.mrb[74].mxu1 }
 0x265   :  { %v1226_v6 = vadd.f32 %v1158_v16, %v1154_v63  ;;  %v1165_v44 = vsel %vm1037_vm2, %v745_v11, 0.0  ;;  %v747_v21 = vpop.f32.mrb[75].mxu1 }
 0x266   :  { %v1261_v58 = vadd.f32 %v3003_v23, %v1225_v47  ;;  %v1229_v56 = vadd.f32 %v1165_v44, %v1161_v3  ;;  %v1166_v41 = vsel %vm1038_vm4, %v747_v21, 0.0 }
 0x267   :  { %v1262_v5 = vadd.f32 %v3011_v9, %v1226_v6  ;;  %v1230_v25 = vadd.f32 %v1166_v41, %v1162_v19  ;;  %1323 = vrot.lane.b32.xlu0 %v3231_v18, %s2143_s2 }
 0x268   :  { %v1263_v30 = vadd.f32 %v3019_v0, %v1229_v56 }
 0x269   :  { %v1264_v31 = vadd.f32 %v3027_v46, %v1230_v25  ;;  %v1279_v49 = vadd.f32 %v1262_v5, %v1261_v58 }
 0x26b   :  { %1325 = vrot.lane.b32.xlu0 %v1279_v49, %s2143_s2  ;;  %v1280_v43 = vadd.f32 %v1264_v31, %v1263_v30 }
 0x26d   :  { %1327 = vrot.lane.b32.xlu1 %v1280_v43, %s2143_s2 }
 0x2a5   :  { %v1298_v52 = vpop.permute.xlu0 %1297 }
 0x2a6   :  { %v1345_v60 = vadd.f32 %v1298_v52, %v2971_v15 }
 0x2a8   :  { %1377 = vrot.lane.b32.xlu0 %v1345_v60, %s2144_s10 }
 0x2a9   :  { %v1300_v23 = vpop.permute.xlu0 %1299 }
 0x2aa   :  { %v1346_v9 = vadd.f32 %v1300_v23, %v3001_v28 }
 0x2ac   :  { %1379 = vrot.lane.b32.xlu1 %v1346_v9, %s2144_s10 }
 0x2ae   :  { %v1302_v0 = vpop.permute.xlu1 %1301 }
 0x2af   :  { %v1347_v46 = vadd.f32 %v1302_v0, %v3041_v1 }
 0x2b1   :  { %1381 = vrot.lane.b32.xlu0 %v1347_v46, %s2144_s10 }
 0x2b2   :  { %v1304_v33 = vpop.permute.xlu1 %1303 }
 0x2b3   :  { %v1348_v37 = vadd.f32 %v1304_v33, %v3056_v45 }
 0x2b5   :  { %1383 = vrot.lane.b32.xlu1 %v1348_v37, %s2144_s10 }
 0x2b6   :  { %v1306_v2 = vpop.permute.xlu1 %1305 }
 0x2b7   :  { %v1349_v15 = vadd.f32 %v1306_v2, %v3076_v12 }
 0x2b9   :  { %1385 = vrot.lane.b32.xlu1 %v1349_v15, %s2144_s10 }
 0x2ba   :  { %v1308_v14 = vpop.permute.xlu1 %1307 }
 0x2bb   :  { %v1350_v28 = vadd.f32 %v1308_v14, %v3091_v7 }
 0x2bd   :  { %1387 = vrot.lane.b32.xlu1 %v1350_v28, %s2144_s10 }
 0x2c5   :  { %v1314_v50 = vpop.permute.xlu1 %1313 }
 0x2c6   :  { %v1353_v1 = vadd.f32 %v1314_v50, %v3142_v40 }
 0x2c7   :  { %v1316_v36 = vpop.permute.xlu0 %1315 }
 0x2c8   :  { %v1354_v4 = vadd.f32 %v1316_v36, %v3155_v53  ;;  %1393 = vrot.lane.b32.xlu1 %v1353_v1, %s2144_s10 }
 0x2c9   :  { %v1310_v45 = vpop.permute.xlu1 %1309 }
 0x2ca   :  { %v1351_v51 = vadd.f32 %v1310_v45, %v3113_v32  ;;  %1395 = vrot.lane.b32.xlu0 %v1354_v4, %s2144_s10 }
 0x2cc   :  { %1389 = vrot.lane.b32.xlu1 %v1351_v51, %s2144_s10 }
 0x2cd   :  { %v1312_v12 = vpop.permute.xlu1 %1311  ;;  %v1318_v39 = vpop.permute.xlu0 %1317 }
 0x2ce   :  { %v1352_v7 = vadd.f32 %v1312_v12, %v3124_v27  ;;  %v1355_v42 = vadd.f32 %v1318_v39, %v3179_v35 }
 0x2d0   :  { %1397 = vrot.lane.b32.xlu0 %v1355_v42, %s2144_s10  ;;  %1391 = vrot.lane.b32.xlu1 %v1352_v7, %s2144_s10 }
 0x2d1   :  { %v1320_v40 = vpop.permute.xlu0 %1319 }
 0x2d2   :  { %v1356_v53 = vadd.f32 %v1320_v40, %v3196_v29 }
 0x2d4   :  { %1399 = vrot.lane.b32.xlu0 %v1356_v53, %s2144_s10 }
 0x2d5   :  { %v1322_v32 = vpop.permute.xlu0 %1321 }
 0x2d6   :  { %v1357_v57 = vadd.f32 %v1322_v32, %v3216_v13 }
 0x2d8   :  { %1401 = vrot.lane.b32.xlu0 %v1357_v57, %s2144_s10 }
 0x2d9   :  { %v1324_v55 = vpop.permute.xlu0 %1323 }
 0x2da   :  { %v1358_v20 = vadd.f32 %v1324_v55, %v3231_v18 }
 0x2dc   :  { %1403 = vrot.lane.b32.xlu0 %v1358_v20, %s2144_s10 }
 0x2dd   :  { %v1326_v27 = vpop.permute.xlu0 %1325 }
 0x2de   :  { %v1359_v35 = vadd.f32 %v1326_v27, %v1279_v49 }
 0x2df   :  { %v1328_v48 = vpop.permute.xlu1 %1327 }
 0x2e0   :  { %v1360_v22 = vadd.f32 %v1328_v48, %v1280_v43  ;;  %1405 = vrot.lane.b32.xlu0 %v1359_v35, %s2144_s10 }
 0x2e2   :  { %1407 = vrot.lane.b32.xlu1 %v1360_v22, %s2144_s10 }
 0x31a   :  { %v1378_v29 = vpop.permute.xlu0 %1377 }
 0x31b   :  { %v1425_v59 = vadd.f32 %v1378_v29, %v1345_v60 }
 0x31d   :  { %1457 = vrot.lane.b32.xlu0 %v1425_v59, %s2145_s11 }
 0x31e   :  { %v1380_v61 = vpop.permute.xlu1 %1379 }
 0x31f   :  { %v1426_v54 = vadd.f32 %v1380_v61, %v1346_v9 }
 0x321   :  { %1459 = vrot.lane.b32.xlu1 %v1426_v54, %s2145_s11 }
 0x323   :  { %v1382_v13 = vpop.permute.xlu0 %1381 }
 0x324   :  { %v1427_v10 = vadd.f32 %v1382_v13, %v1347_v46 }
 0x326   :  { %1461 = vrot.lane.b32.xlu0 %v1427_v10, %s2145_s11 }
 0x327   :  { %v1384_v38 = vpop.permute.xlu1 %1383 }
 0x328   :  { %v1428_v34 = vadd.f32 %v1384_v38, %v1348_v37 }
 0x32a   :  { %1463 = vrot.lane.b32.xlu1 %v1428_v34, %s2145_s11 }
 0x32b   :  { %v1386_v26 = vpop.permute.xlu1 %1385 }
 0x32c   :  { %v1429_v24 = vadd.f32 %v1386_v26, %v1349_v15 }
 0x32e   :  { %1465 = vrot.lane.b32.xlu1 %v1429_v24, %s2145_s11 }
 0x32f   :  { %v1388_v18 = vpop.permute.xlu1 %1387 }
 0x330   :  { %v1430_v17 = vadd.f32 %v1388_v18, %v1350_v28 }
 0x332   :  { %1467 = vrot.lane.b32.xlu1 %v1430_v17, %s2145_s11 }
 0x33a   :  { %v1394_v63 = vpop.permute.xlu1 %1393 }
 0x33b   :  { %v3283_v47 = vadd.f32 %v1394_v63, %v1353_v1 }
 0x33c   :  { %v1396_v16 = vpop.permute.xlu0 %1395 }
 0x33d   :  { %v1434_v11 = vadd.f32 %v1396_v16, %v1354_v4  ;;  %1473 = vrot.lane.b32.xlu1 %v3283_v47, %s2145_s11 }
 0x33e   :  { %v1390_v8 = vpop.permute.xlu1 %1389 }
 0x33f   :  { %v1431_v3 = vadd.f32 %v1390_v8, %v1351_v51  ;;  %1475 = vrot.lane.b32.xlu0 %v1434_v11, %s2145_s11 }
 0x341   :  { %1469 = vrot.lane.b32.xlu1 %v1431_v3, %s2145_s11 }
 0x342   :  { %v1398_v6 = vpop.permute.xlu0 %1397  ;;  %v1392_v44 = vpop.permute.xlu1 %1391 }
 0x343   :  { %v1435_v21 = vadd.f32 %v1398_v6, %v1355_v42  ;;  %v1432_v62 = vadd.f32 %v1392_v44, %v1352_v7 }
 0x345   :  { %1477 = vrot.lane.b32.xlu0 %v1435_v21, %s2145_s11  ;;  %1471 = vrot.lane.b32.xlu1 %v1432_v62, %s2145_s11 }
 0x346   :  { %v1400_v19 = vpop.permute.xlu0 %1399 }
 0x347   :  { %v1436_v58 = vadd.f32 %v1400_v19, %v1356_v53 }
 0x349   :  { %1479 = vrot.lane.b32.xlu0 %v1436_v58, %s2145_s11 }
 0x34a   :  { %v1402_v56 = vpop.permute.xlu0 %1401 }
 0x34b   :  { %v1437_v41 = vadd.f32 %v1402_v56, %v1357_v57 }
 0x34d   :  { %1481 = vrot.lane.b32.xlu0 %v1437_v41, %s2145_s11 }
 0x34e   :  { %v1404_v5 = vpop.permute.xlu0 %1403 }
 0x34f   :  { %v1438_v25 = vadd.f32 %v1404_v5, %v1358_v20 }
 0x351   :  { %1483 = vrot.lane.b32.xlu0 %v1438_v25, %s2145_s11 }
 0x352   :  { %v1406_v30 = vpop.permute.xlu0 %1405 }
 0x353   :  { %v3294_v31 = vadd.f32 %v1406_v30, %v1359_v35 }
 0x354   :  { %v1408_v49 = vpop.permute.xlu1 %1407 }
 0x355   :  { %v3296_v43 = vadd.f32 %v1408_v49, %v1360_v22  ;;  %1485 = vrot.lane.b32.xlu0 %v3294_v31, %s2145_s11 }
 0x357   :  { %1487 = vrot.lane.b32.xlu1 %v3296_v43, %s2145_s11 }
 0x38f   :  { %v1458_v23 = vpop.permute.xlu0 %1457 }
 0x390   :  { %v1505_v33 = vadd.f32 %v1458_v23, %v1425_v59 }
 0x392   :  { %v1525_v28 = vsel %vm1524_vm15, %v1505_v33, 0.0 }
 0x393   :  { %v1460_v52 = vpop.permute.xlu1 %1459 }
 0x394   :  { %v1506_v46 = vadd.f32 %v1460_v52, %v1426_v54 }
 0x396   :  { %v1526_v15 = vsel %vm1524_vm15, %v1506_v46, 0.0 }
 0x397   :  { %v1527_v36 = vadd.f32 %v1526_v15, %v1525_v28 }
 0x398   :  { %v1462_v0 = vpop.permute.xlu0 %1461 }
 0x399   :  { %v1507_v37 = vadd.f32 %v1462_v0, %v1427_v10 }
 0x39b   :  { %v1528_v50 = vsel %vm1524_vm15, %v1507_v37, 0.0 }
 0x39c   :  { %v1464_v60 = vpop.permute.xlu1 %1463  ;;  %v1529_v12 = vadd.f32 %v1528_v50, %v1527_v36 }
 0x39d   :  { %v1508_v14 = vadd.f32 %v1464_v60, %v1428_v34 }
 0x39f   :  { %v1530_v45 = vsel %vm1524_vm15, %v1508_v14, 0.0 }
 0x3a0   :  { %v1466_v9 = vpop.permute.xlu1 %1465  ;;  %v1531_v7 = vadd.f32 %v1530_v45, %v1529_v12 }
 0x3a1   :  { %v1509_v1 = vadd.f32 %v1466_v9, %v1429_v24 }
 0x3a3   :  { %v1532_v39 = vsel %vm1524_vm15, %v1509_v1, 0.0 }
 0x3a4   :  { %v1468_v2 = vpop.permute.xlu1 %1467  ;;  %v1533_v57 = vadd.f32 %v1532_v39, %v1531_v7 }
 0x3a5   :  { %v1510_v51 = vadd.f32 %v1468_v2, %v1430_v17 }
 0x3a7   :  { %v1534_v53 = vsel %vm1524_vm15, %v1510_v51, 0.0 }
 0x3a8   :  { %v1535_v20 = vadd.f32 %v1534_v53, %v1533_v57 }
 0x3af   :  { %v1474_v4 = vpop.permute.xlu1 %1473 }
 0x3b0   :  { %v1513_v13 = vadd.f32 %v1474_v4, %v3283_v47 }
 0x3b1   :  { %v1476_v42 = vpop.permute.xlu0 %1475 }
 0x3b2   :  { %v1514_v29 = vadd.f32 %v1476_v42, %v1434_v11  ;;  %v1697_v17 = vsel %vm1524_vm15, %v1513_v13, 0.0 }
 0x3b3   :  { %v1470_v40 = vpop.permute.xlu1 %1469 }
 0x3b4   :  { %v1511_v32 = vadd.f32 %v1470_v40, %v1431_v3  ;;  %v1698_v34 = vsel %vm1524_vm15, %v1514_v29, 0.0 }
 0x3b5   :  { %v1699_v8 = vadd.f32 %v1698_v34, %v1697_v17 }
 0x3b6   :  { %v1536_v55 = vsel %vm1524_vm15, %v1511_v32, 0.0 }
 0x3b7   :  { %v1478_v27 = vpop.permute.xlu0 %1477  ;;  %v1472_v35 = vpop.permute.xlu1 %1471  ;;  %v1537_v22 = vadd.f32 %v1536_v55, %v1535_v20 }
 0x3b8   :  { %v1512_v48 = vadd.f32 %v1472_v35, %v1432_v62  ;;  %v1515_v10 = vadd.f32 %v1478_v27, %v1435_v21 }
 0x3ba   :  { %v1538_v59 = vsel %vm1524_vm15, %v1512_v48, 0.0  ;;  %v1700_v63 = vsel %vm1524_vm15, %v1515_v10, 0.0 }
 0x3bb   :  { %v1539_v61 = vadd.f32 %v1538_v59, %v1537_v22  ;;  %v1480_v54 = vpop.permute.xlu0 %1479  ;;  %v1701_v6 = vadd.f32 %v1700_v63, %v1699_v8 }
 0x3bc   :  { %v1516_v26 = vadd.f32 %v1480_v54, %v1436_v58  ;;  %v1523_v58 = vld [vmem:[%s3406_s3] sm:$0x1]  ;;  %s2146_s3 = smov 120  }
 0x3bd   :  { %v1540_v38 = vrot.slane %v1539_v61, 4 }
 0x3be   :  { %v1702_v3 = vsel %vm1524_vm15, %v1516_v26, 0.0 }
 0x3bf   :  { %v1541_v24 = vadd.f32 %v1540_v38, %v1539_v61  ;;  %v1482_v18 = vpop.permute.xlu0 %1481  ;;  %v1703_v56 = vadd.f32 %v1702_v3, %v1701_v6 }
 0x3c0   :  { %v1517_v16 = vadd.f32 %v1482_v18, %v1437_v41 }
 0x3c1   :  { %v1542_v11 = vrot.slane %v1541_v24, 2 }
 0x3c2   :  { %v1704_v47 = vsel %vm1524_vm15, %v1517_v16, 0.0 }
 0x3c3   :  { %v1543_v44 = vadd.f32 %v1542_v11, %v1541_v24  ;;  %v1484_v62 = vpop.permute.xlu0 %1483  ;;  %v1705_v41 = vadd.f32 %v1704_v47, %v1703_v56 }
 0x3c4   :  { %v1518_v21 = vadd.f32 %v1484_v62, %v1438_v25 }
 0x3c5   :  { %v1544_v19 = vrot.slane %v1543_v44, 1 }
 0x3c6   :  { %v1706_v5 = vsel %vm1524_vm15, %v1518_v21, 0.0 }
 0x3c7   :  { %v1545_v30 = vadd.f32 %v1544_v19, %v1543_v44  ;;  %v1486_v49 = vpop.permute.xlu0 %1485  ;;  %v1707_v23 = vadd.f32 %v1706_v5, %v1705_v41 }
 0x3c8   :  { %v1519_v52 = vadd.f32 %v1486_v49, %v3294_v31 }
 0x3c9   :  { %v1546_v60 = vadd.f32 %v1545_v30, %v1523_v58  ;;  %v1488_v9 = vpop.permute.xlu1 %1487 }
 0x3ca   :  { %v1708_v0 = vsel %vm1524_vm15, %v1519_v52, 0.0  ;;  %v1520_v25 = vadd.f32 %v1488_v9, %v3296_v43 }
 0x3cb   :  { %2064 = vtanh.f32 %v1546_v60  ;;  %v1709_v46 = vadd.f32 %v1708_v0, %v1707_v23 }
 0x3cc   :  { %v1710_v33 = vsel %vm1524_vm15, %v1520_v25, 0.0 }
 0x3cd   :  { %v1711_v37 = vadd.f32 %v1710_v33, %v1709_v46 }
 0x3cf   :  { %v1712_v2 = vrot.slane %v1711_v37, 4 }
 0x3d1   :  { %v1713_v15 = vadd.f32 %v1712_v2, %v1711_v37 }
 0x3d3   :  { %v1714_v14 = vrot.slane %v1713_v15, 2 }
 0x3d5   :  { %v3324_v28 = vpop.eup %2064  ;;  %v1715_v50 = vadd.f32 %v1714_v14, %v1713_v15  ;;  %v1522_v15 = vld [vmem:[%s3408_s5] sm:$0x3] }
 0x3d6   :  { %1562 = vrot.lane.b32.xlu0 %v3324_v28, %s2146_s3  ;;  %v1566_v31 = vmul.f32 2.0, %v3324_v28  ;;  %v1548_v24 = vmul.f32 0.5, %v3324_v28  ;;  %v1521_v14 = vld [vmem:[%s3407_s4] sm:$0x3] }
 0x3d7   :  { %v1716_v1 = vrot.slane %v1715_v50, 1 }
 0x3d8   :  { %v1567_v36 = vmul.f32 1.442695, %v1566_v31  ;;  %v1549_v17 = vmul.f32 1.442695, %v1548_v24 }
 0x3d9   :  { %v1717_v43 = vadd.f32 %v1716_v1, %v1715_v50 }
 0x3da   :  { %2066 = vpow2.f32 %v1567_v36 }
 0x3db   :  { %v1718_v4 = vadd.f32 %v1717_v43, %v1523_v58 }
 0x3dd   :  { %2068 = vtanh.f32 %v1718_v4 }
 0x3e4   :  { %v2067_v45 = vpop.eup %2066 }
 0x3e5   :  { %v1580_v51 = vmul.f32 2.0, %v2067_v45 }
 0x3e7   :  { %v3329_v12 = vpop.eup %2068  ;;  %1582 = vrot.lane.b32.xlu0 %v1580_v51, %s2146_s3 }
 0x3e8   :  { %1744 = vrot.lane.b32.xlu1 %v3329_v12, %s2146_s3  ;;  %v1741_v39 = vmul.f32 2.0, %v3329_v12  ;;  %v1720_v18 = vmul.f32 0.5, %v3329_v12  ;;  %v1730_v58 = vrot.slane %v3329_v12, 7 }
 0x3ea   :  { %v1742_v7 = vmul.f32 1.442695, %v1741_v39  ;;  %v1721_v63 = vmul.f32 1.442695, %v1720_v18 }
 0x3ec   :  { %1597 = vrot.lane.b32.xlu1 %v1580_v51, %s2147_s13  ;;  %2070 = vpow2.f32 %v1742_v7 }
 0x3f6   :  { %v2071_v42 = vpop.eup %2070 }
 0x3f7   :  { %v1758_v40 = vmul.f32 2.0, %v2071_v42 }
 0x3f9   :  { %1775 = vrot.lane.b32.xlu1 %v1758_v40, %s2147_s13  ;;  %1760 = vrot.lane.b32.xlu0 %v1758_v40, %s2146_s3 }
 0x448   :  { %v3338_v53 = vpop.permute.xlu0 %1562 }
 0x449   :  { %v3342_v32 = vsub.f32 %v3324_v28, %v3338_v53 }
 0x44b   :  { %v1570_v57 = vmul.f32 %v3342_v32, %v3342_v32 }
 0x44d   :  { %1593 = vrot.lane.b32.xlu1 %v1570_v57, %s2148_s14  ;;  %1576 = vrot.lane.b32.xlu0 %v1570_v57, %s2149_s15 }
 0x459   :  { %v1583_v35 = vpop.permute.xlu0 %1582 }
 0x45a   :  { %v1745_v55 = vpop.permute.xlu1 %1744  ;;  %2072 = vrcp.f32 %v1583_v35 }
 0x45b   :  { %v3347_v20 = vsub.f32 %v3329_v12, %v1745_v55 }
 0x45d   :  { %v1748_v27 = vmul.f32 %v3347_v20, %v3347_v20 }
 0x45e   :  { %v1598_v48 = vpop.permute.xlu1 %1597 }
 0x45f   :  { %1771 = vrot.lane.b32.xlu1 %v1748_v27, %s2148_s14  ;;  %1754 = vrot.lane.b32.xlu0 %v1748_v27, %s2149_s15  ;;  %2074 = vrcp.f32 %v1598_v48 }
 0x463   :  { %1749 = vrot.lane.b32.xlu1 %v3329_v12, %s2147_s13  ;;  %1571 = vrot.lane.b32.xlu0 %v3324_v28, %s2147_s13 }
 0x464   :  { %v2073_v54 = vpop.eup %2072 }
 0x469   :  { %v2075_v38 = vpop.eup %2074 }
 0x46b   :  { %v1776_v22 = vpop.permute.xlu1 %1775  ;;  %v1761_v29 = vpop.permute.xlu0 %1760 }
 0x46c   :  { %2076 = vrcp.f32 %v1776_v22 }
 0x46d   :  { %2078 = vrcp.f32 %v1761_v29 }
 0x46e   :  { %2080 = vpow2.f32 %v1549_v17 }
 0x46f   :  { %2082 = vpow2.f32 %v1721_v63 }
 0x476   :  { %v2077_v11 = vpop.eup %2076 }
 0x477   :  { %v2079_v44 = vpop.eup %2078 }
 0x478   :  { %v2081_v21 = vpop.eup %2080 }
 0x479   :  { %v2083_v19 = vpop.eup %2082 }
 0x47a   :  { %v1724_v56 = vrot.slane %v2083_v19, 7 }
 0x4bf   :  { %v1594_v59 = vpop.permute.xlu1 %1593  ;;  %v1577_v61 = vpop.permute.xlu0 %1576 }
 0x4c0   :  { %v1596_v13 = vadd.f32 %v2067_v45, %v1594_v59  ;;  %v1579_v10 = vadd.f32 %v2067_v45, %v1577_v61 }
 0x4c2   :  { %v1601_v34 = vmul.f32 %v2075_v38, %v1596_v13  ;;  %v1586_v26 = vmul.f32 %v2073_v54, %v1579_v10 }
 0x4c4   :  { %1603 = vrot.lane.b32.xlu0 %v1601_v34, %s2146_s3  ;;  %1588 = vrot.lane.b32.xlu1 %v1586_v26, %s2147_s13 }
 0x4d1   :  { %v1772_v16 = vpop.permute.xlu1 %1771  ;;  %v1755_v8 = vpop.permute.xlu0 %1754 }
 0x4d2   :  { %v1774_v3 = vadd.f32 %v2071_v42, %v1772_v16  ;;  %v1757_v6 = vadd.f32 %v2071_v42, %v1755_v8 }
 0x4d4   :  { %v1779_v62 = vmul.f32 %v2077_v11, %v1774_v3  ;;  %v1764_v47 = vmul.f32 %v2079_v44, %v1757_v6 }
 0x4d5   :  { %v1750_v5 = vpop.permute.xlu1 %1749  ;;  %v1572_v30 = vpop.permute.xlu0 %1571 }
 0x4d6   :  { %1781 = vrot.lane.b32.xlu1 %v1779_v62, %s2146_s3  ;;  %1766 = vrot.lane.b32.xlu0 %v1764_v47, %s2147_s13  ;;  %v1574_v41 = vsub.f32 %v3324_v28, %v1572_v30  ;;  %v1752_v25 = vsub.f32 %v3329_v12, %v1750_v5 }
 0x4da   :  { %1557 = vrot.lane.b32.xlu1 %v2081_v21, %s2150_s16  ;;  %1552 = vrot.lane.b32.xlu0 %v2081_v21, %s2151_s17 }
 0x4de   :  { %1733 = vrot.lane.b32.xlu1 %v1724_v56, %s2150_s16  ;;  %1725 = vrot.lane.b32.xlu0 %v1724_v56, %s2151_s17 }
 0x4e2   :  { %1737 = vrot.lane.b32.xlu0 %v1730_v58, %s2146_s3 }
 0x536   :  { %v1589_v49 = vpop.permute.xlu1 %1588  ;;  %v1604_v52 = vpop.permute.xlu0 %1603 }
 0x537   :  { %v1591_v60 = vadd.f32 %v1589_v49, %v1574_v41  ;;  %v1606_v23 = vadd.f32 %v1604_v52, %v3342_v32 }
 0x539   :  { %v1965_v9 = vadd.f32 -0.5, %v1591_v60  ;;  %v1966_v0 = vadd.f32 -0.5, %v1606_v23 }
 0x53b   :  { %1609 = vrot.lane.b32.xlu1 %v1965_v9, %s2150_s16  ;;  %1626 = vrot.lane.b32.xlu0 %v1966_v0, %s2151_s17 }
 0x548   :  { %v1782_v46 = vpop.permute.xlu1 %1781  ;;  %v1767_v33 = vpop.permute.xlu0 %1766 }
 0x549   :  { %v1784_v37 = vadd.f32 %v1782_v46, %v3347_v20  ;;  %v1769_v2 = vadd.f32 %v1767_v33, %v1752_v25 }
 0x54b   :  { %v1968_v50 = vadd.f32 -0.5, %v1784_v37  ;;  %v1967_v31 = vadd.f32 -0.5, %v1769_v2 }
 0x54c   :  { %v1558_v1 = vpop.permute.xlu1 %1557  ;;  %v1553_v36 = vpop.permute.xlu0 %1552 }
 0x54d   :  { %v1560_v43 = vmul.f32 %v1558_v1, %v1522_v15  ;;  %v1555_v4 = vmul.f32 %v1553_v36, %v1521_v14  ;;  %1787 = vrot.lane.b32.xlu1 %v1967_v31, %s2150_s16  ;;  %1803 = vrot.lane.b32.xlu0 %v1968_v50, %s2151_s17 }
 0x54f   :  { %v1565_v45 = vadd.f32 %v3338_v53, %v1560_v43  ;;  %v1556_v51 = vadd.f32 %v3324_v28, %v1555_v4 }
 0x550   :  { %v1734_v12 = vpop.permute.xlu1 %1733  ;;  %v1726_v39 = vpop.permute.xlu0 %1725 }
 0x551   :  { %v1647_v7 = vsub.f32 0.0, %v1565_v45  ;;  %v1641_v42 = vsub.f32 0.0, %v1556_v51  ;;  %v1728_v40 = vmul.f32 %v1726_v39, %v1521_v14  ;;  %v1736_v55 = vmul.f32 %v1734_v12, %v1522_v15 }
 0x553   :  { %v1648_v32 = vmul.f32 1.442695, %v1647_v7  ;;  %v1642_v57 = vmul.f32 1.442695, %v1641_v42  ;;  %v1732_v20 = vadd.f32 %v1730_v58, %v1728_v40 }
 0x554   :  { %v1738_v27 = vpop.permute.xlu0 %1737 }
 0x555   :  { %2084 = vpow2.f32 %v1648_v32  ;;  %v1818_v35 = vsub.f32 0.0, %v1732_v20  ;;  %v1740_v48 = vadd.f32 %v1738_v27, %v1736_v55 }
 0x556   :  { %2086 = vpow2.f32 %v1642_v57 }
 0x557   :  { %v1819_v22 = vmul.f32 1.442695, %v1818_v35  ;;  %v1824_v29 = vsub.f32 0.0, %v1740_v48 }
 0x559   :  { %2088 = vpow2.f32 %v1819_v22  ;;  %v1825_v53 = vmul.f32 1.442695, %v1824_v29 }
 0x55b   :  { %2090 = vpow2.f32 %v1825_v53 }
 0x55f   :  { %v2085_v28 = vpop.eup %2084 }
 0x560   :  { %v2087_v59 = vpop.eup %2086  ;;  %v1650_v61 = vadd.f32 1.0, %v2085_v28 }
 0x561   :  { %v1644_v54 = vadd.f32 1.0, %v2087_v59 }
 0x562   :  { %2092 = vrcp.f32 %v1650_v61 }
 0x563   :  { %v2089_v13 = vpop.eup %2088  ;;  %2094 = vrcp.f32 %v1644_v54 }
 0x564   :  { %v1821_v10 = vadd.f32 1.0, %v2089_v13 }
 0x565   :  { %v2091_v38 = vpop.eup %2090 }
 0x566   :  { %2096 = vrcp.f32 %v1821_v10  ;;  %v1827_v34 = vadd.f32 1.0, %v2091_v38 }
 0x568   :  { %2098 = vrcp.f32 %v1827_v34 }
 0x56c   :  { %v2093_v26 = vpop.eup %2092 }
 0x56d   :  { %v2095_v24 = vpop.eup %2094  ;;  %2100 = vlog2.f32 %v2093_v26  ;;  %v1663_v18 = vsub.f32 1.0, %v2093_v26 }
 0x56e   :  { %v1656_v17 = vsub.f32 1.0, %v2095_v24  ;;  %2102 = vlog2.f32 %v2095_v24 }
 0x56f   :  { %2104 = vlog2.f32 %v1663_v18 }
 0x570   :  { %v2097_v63 = vpop.eup %2096  ;;  %2106 = vlog2.f32 %v1656_v17 }
 0x571   :  { %2108 = vlog2.f32 %v2097_v63  ;;  %v1833_v16 = vsub.f32 1.0, %v2097_v63 }
 0x572   :  { %v2099_v8 = vpop.eup %2098 }
 0x573   :  { %2110 = vlog2.f32 %v1833_v16  ;;  %v1840_v11 = vsub.f32 1.0, %v2099_v8 }
 0x574   :  { %2112 = vlog2.f32 %v2099_v8 }
 0x575   :  { %2114 = vlog2.f32 %v1840_v11 }
 0x577   :  { %v2101_v3 = vpop.eup %2100 }
 0x578   :  { %v2103_v6 = vpop.eup %2102  ;;  %v1661_v44 = vmul.f32 0.6931472, %v2101_v3 }
 0x579   :  { %v2105_v62 = vpop.eup %2104  ;;  %v1654_v47 = vmul.f32 0.6931472, %v2103_v6 }
 0x57a   :  { %v2107_v21 = vpop.eup %2106  ;;  %v1662_v19 = vmax.f32 %v1661_v44, -100.0  ;;  %v1665_v56 = vmul.f32 0.6931472, %v2105_v62 }
 0x57b   :  { %v2109_v58 = vpop.eup %2108  ;;  %v1655_v5 = vmax.f32 %v1654_v47, -100.0  ;;  %v1658_v30 = vmul.f32 0.6931472, %v2107_v21 }
 0x57c   :  { %v1666_v41 = vmax.f32 %v1665_v56, -100.0  ;;  %v1831_v49 = vmul.f32 0.6931472, %v2109_v58  ;;  %v1682_v9 = vmul.f32 %v2095_v24, %v1662_v19 }
 0x57d   :  { %v2111_v52 = vpop.eup %2110  ;;  %v1659_v60 = vmax.f32 %v1658_v30, -100.0  ;;  %v1667_v37 = vmul.f32 %v2093_v26, %v1655_v5 }
 0x57e   :  { %v2113_v23 = vpop.eup %2112  ;;  %v1683_v0 = vmul.f32 %v1666_v41, %v1656_v17  ;;  %v1832_v25 = vmax.f32 %v1831_v49, -100.0  ;;  %v1835_v46 = vmul.f32 0.6931472, %v2111_v52 }
 0x57f   :  { %v2115_v33 = vpop.eup %2114  ;;  %v1668_v2 = vmul.f32 %v1663_v18, %v1659_v60  ;;  %v1838_v15 = vmul.f32 0.6931472, %v2113_v23 }
 0x580   :  { %v1684_v14 = vadd.f32 %v1683_v0, %v1682_v9  ;;  %v1836_v50 = vmax.f32 %v1835_v46, -100.0  ;;  %v1842_v31 = vmul.f32 0.6931472, %v2115_v33  ;;  %v1844_v4 = vmul.f32 %v2099_v8, %v1832_v25 }
 0x581   :  { %v1669_v1 = vadd.f32 %v1668_v2, %v1667_v37  ;;  %v1839_v36 = vmax.f32 %v1838_v15, -100.0 }
 0x582   :  { %v1685_v43 = vsel %vm1612_vm14, %v1684_v14, 0.0  ;;  %v1845_v45 = vmul.f32 %v1840_v11, %v1836_v50  ;;  %v1843_v51 = vmax.f32 %v1842_v31, -100.0 }
 0x583   :  { %1686 = vadd.xlane.f32.xlu1 %v1685_v43  ;;  %v1670_v12 = vsel %vm1612_vm14, %v1669_v1, 0.0  ;;  %v1862_v7 = vmul.f32 %v2097_v63, %v1839_v36 }
 0x584   :  { %1671 = vadd.xlane.f32.xlu0 %v1670_v12  ;;  %v1846_v39 = vadd.f32 %v1845_v45, %v1844_v4  ;;  %v1863_v42 = vmul.f32 %v1843_v51, %v1833_v16 }
 0x586   :  { %v1848_v40 = vrot.slane %v1846_v39, 1  ;;  %v1864_v32 = vadd.f32 %v1863_v42, %v1862_v7 }
 0x588   :  { %v1850_v57 = vsel %vm1612_vm14, %v1848_v40, 0.0  ;;  %v1866_v55 = vrot.slane %v1864_v32, 1 }
 0x58a   :  { %v1868_v20 = vsel %vm1612_vm14, %v1866_v55, 0.0 }
 0x5ad   :  { %v1610_v27 = vpop.permute.xlu1 %1609  ;;  %v1627_v35 = vpop.permute.xlu0 %1626 }
 0x5ae   :  { %v1613_v48 = vsel %vm1612_vm14, %v1610_v27, 0.0  ;;  %v1629_v22 = vsel %vm1612_vm14, %v1627_v35, 0.0 }
 0x5af   :  { %1614 = vadd.xlane.f32.xlu1 %v1613_v48  ;;  %1630 = vadd.xlane.f32.xlu0 %v1629_v22 }
 0x5bf   :  { %v1788_v29 = vpop.permute.xlu1 %1787  ;;  %v1804_v53 = vpop.permute.xlu0 %1803 }
 0x5c0   :  { %v1790_v28 = vsel %vm1612_vm14, %v1788_v29, 0.0  ;;  %v1806_v59 = vsel %vm1612_vm14, %v1804_v53, 0.0 }
 0x5c1   :  { %1791 = vadd.xlane.f32.xlu0 %v1790_v28  ;;  %1807 = vadd.xlane.f32.xlu1 %v1806_v59 }
 0x5c5   :  { %1851 = vadd.xlane.f32.xlu0 %v1850_v57  ;;  %1869 = vadd.xlane.f32.xlu1 %v1868_v20 }
 0x610   :  { %v1687_v54 = vpop.xlane.xlu1 %1686 }
 0x611   :  { %v1672_v61 = vpop.xlane.xlu0 %1671  ;;  %v1688_v10 = vrot.slane %v1687_v54, 4 }
 0x612   :  { %v1673_v13 = vrot.slane %v1672_v61, 4 }
 0x613   :  { %v1689_v34 = vadd.f32 %v1688_v10, %v1687_v54 }
 0x614   :  { %v1674_v38 = vadd.f32 %v1673_v13, %v1672_v61 }
 0x615   :  { %v1690_v16 = vrot.slane %v1689_v34, 2 }
 0x616   :  { %v1675_v18 = vrot.slane %v1674_v38, 2 }
 0x617   :  { %v1691_v62 = vadd.f32 %v1690_v16, %v1689_v34 }
 0x618   :  { %v1676_v44 = vadd.f32 %v1675_v18, %v1674_v38 }
 0x619   :  { %v1692_v5 = vrot.slane %v1691_v62, 1 }
 0x61a   :  { %v1677_v58 = vrot.slane %v1676_v44, 1 }
 0x61b   :  { %v1693_v52 = vadd.f32 %v1692_v5, %v1691_v62 }
 0x61c   :  { %v1678_v49 = vadd.f32 %v1677_v58, %v1676_v44 }
 0x63c   :  { %v1615_v26 = vpop.xlane.xlu1 %1614  ;;  %v1631_v24 = vpop.xlane.xlu0 %1630 }
 0x63d   :  { %v1616_v17 = vrot.slane %v1615_v26, 4  ;;  %v1632_v63 = vrot.slane %v1631_v24, 4 }
 0x63f   :  { %v1617_v8 = vadd.f32 %v1616_v17, %v1615_v26  ;;  %v1633_v11 = vadd.f32 %v1632_v63, %v1631_v24 }
 0x641   :  { %v1618_v3 = vrot.slane %v1617_v8, 2  ;;  %v1634_v6 = vrot.slane %v1633_v11, 2 }
 0x643   :  { %v1619_v47 = vadd.f32 %v1618_v3, %v1617_v8  ;;  %v1635_v21 = vadd.f32 %v1634_v6, %v1633_v11 }
 0x645   :  { %v1620_v19 = vrot.slane %v1619_v47, 1  ;;  %v1636_v56 = vrot.slane %v1635_v21, 1 }
 0x647   :  { %v1621_v30 = vadd.f32 %v1620_v19, %v1619_v47  ;;  %v1637_v41 = vadd.f32 %v1636_v56, %v1635_v21 }
 0x649   :  { %2021 = vpush %v1621_v30 }
 0x64a   :  { %2023 = vpush %v1637_v41 }
 0x64b   :  { %2025 = vpush %v1678_v49 }
 0x64c   :  { %2027 = vpush %v1693_v52 }
 0x64e   :  { %v1808_v60 = vpop.xlane.xlu1 %1807  ;;  %v1792_v23 = vpop.xlane.xlu0 %1791 }
 0x64f   :  { %v1809_v9 = vrot.slane %v1808_v60, 4  ;;  %v1793_v0 = vrot.slane %v1792_v23, 4 }
 0x651   :  { %v1810_v25 = vadd.f32 %v1809_v9, %v1808_v60  ;;  %v1794_v46 = vadd.f32 %v1793_v0, %v1792_v23 }
 0x652   :  { %v1870_v33 = vpop.xlane.xlu1 %1869  ;;  %v1852_v37 = vpop.xlane.xlu0 %1851 }
 0x653   :  { %v1811_v2 = vrot.slane %v1810_v25, 2  ;;  %v1795_v15 = vrot.slane %v1794_v46, 2  ;;  %v1871_v14 = vrot.slane %v1870_v33, 4  ;;  %v1853_v50 = vrot.slane %v1852_v37, 4 }
 0x655   :  { %v1872_v31 = vadd.f32 %v1871_v14, %v1870_v33  ;;  %v1854_v1 = vadd.f32 %v1853_v50, %v1852_v37  ;;  %v1796_v36 = vadd.f32 %v1795_v15, %v1794_v46  ;;  %v1812_v43 = vadd.f32 %v1811_v2, %v1810_v25 }
 0x657   :  { %v1873_v4 = vrot.slane %v1872_v31, 2  ;;  %v1855_v45 = vrot.slane %v1854_v1, 2  ;;  %v1797_v51 = vrot.slane %v1796_v36, 1  ;;  %v1813_v12 = vrot.slane %v1812_v43, 1 }
 0x659   :  { %v1874_v39 = vadd.f32 %v1873_v4, %v1872_v31  ;;  %v1856_v7 = vadd.f32 %v1855_v45, %v1854_v1  ;;  %v1798_v42 = vadd.f32 %v1797_v51, %v1796_v36  ;;  %v1814_v40 = vadd.f32 %v1813_v12, %v1812_v43 }
 0x65b   :  { %2029 = vpush %v1798_v42  ;;  %v1857_v32 = vrot.slane %v1856_v7, 1  ;;  %v1875_v57 = vrot.slane %v1874_v39, 1 }
 0x65c   :  { %2031 = vpush %v1814_v40 }
 0x65d   :  { %v1858_v55 = vadd.f32 %v1857_v32, %v1856_v7  ;;  %v1876_v20 = vadd.f32 %v1875_v57, %v1874_v39 }
 0x65f   :  { %2033 = vpush %v1858_v55 }
 0x660   :  { %2035 = vpush %v1876_v20 }
 0x67a   :  { %s2022_s4 = spop %2021 }
 0x67b   :  { %s2024_s5 = spop %2023  ;;  %v1623_v59 = vstv %s2022_s4 }
 0x67c   :  { %s2026_s22 = spop %2025  ;;  %v1639_v61 = vstv %s2024_s5 }
 0x67d   :  { %s2028_s1 = spop %2027  ;;  %v1680_v27 = vstv %s2026_s22  ;;  %v1640_v38 = vadd.f32 %v1639_v61, %v1623_v59 }
 0x67e   :  { %v1695_v35 = vstv %s2028_s1  ;;  %v1681_v48 = vsub.f32 0.0, %v1680_v27 }
 0x67f   :  { %v1696_v22 = vsub.f32 0.0, %v1695_v35 }
 0x68c   :  { %s2030_s23 = spop %2029 }
 0x68d   :  { %s2032_s24 = spop %2031  ;;  %v1800_v13 = vstv %s2030_s23 }
 0x68e   :  { %v1801_v34 = vadd.f32 %v1800_v13, %v1640_v38  ;;  %v1816_v26 = vstv %s2032_s24 }
 0x690   :  { %s2034_s25 = spop %2033  ;;  %v1817_v24 = vadd.f32 %v1816_v26, %v1801_v34 }
 0x691   :  { %v1860_v29 = vstv %s2034_s25  ;;  %s2036_s26 = spop %2035 }
 0x692   :  { %v1861_v53 = vsub.f32 %v1681_v48, %v1860_v29  ;;  %v1878_v28 = vstv %s2036_s26  ;;  %v1881_v18 = vmul.f32 0.5, %v1817_v24 }
 0x693   :  { %v1879_v54 = vsub.f32 %v1696_v22, %v1878_v28 }
 0x695   :  { %v1882_v10 = vadd.f32 %v1879_v54, %v1861_v53 }
 0x697   :  { %2116 = vrcp.f32 %v1882_v10 }
 0x6a1   :  { %v2117_v17 = vpop.eup %2116 }
 0x6a2   :  { %v1884_v63 = vmul.f32 %v2117_v17, %v1881_v18 }
 0x6a4   :  { %v1885_v16 = vsub.f32 1.0, %v1884_v63 }
 0x6a6   :  { %1886 = vst [vmem:[#allocation2] sm:$0x1] %v1885_v16 }
 0x6a7   :  { %2129 = shalt.err (!%p2126_p4)
}
 0x6a8   :  { %s2130_s9 = scalar_lea.hbm %s3409_s6, 16 }
 0x6a9   :  { %p2131_p5 = scmp.ne.s32.totalorder %s3409_s6, %s2130_s9  ;;  %p2134_p6 = scmp.lt.u32.totalorder %s2130_s9, %s3409_s6 }
 0x6ab   :  { %p2136_p7 = pnand %p2134_p6, %p2131_p5 }
 0x6ad   :  { %2139 = shalt.err (!%p2136_p7)
}
 0x6ae   :  { %1896 = dma.vmem_to_hbm [thread:$0]  %s1894_s28, 16, %s3409_s6, [#allocation3]  }
 0x6af   :  { %2140 = dma.done.wait [#allocation3], 16  }
 0x6b0   :  { %2141 = vsyncadd [#allocation3], 4294967280 }
 0x6b1   :  { %1900 = vsyncpa [#allocation3], 1 }

</bundles_post_ra>
